<compile_context>
chip_gen: v7x
topology: tpu7x:2x2x1
jax: 0.10.0
libtpu: 0.0.40
codegen_flags: <defaults>
</compile_context>

<pallas_src>
import math

import jax
import jax.numpy as jnp
from jax import lax
from jax.experimental import pallas as pl
from jax.experimental.pallas import tpu as pltpu

ANGULAR_MARGIN = 0.2
HYPER_RADIUS = 64.0
BN_EPS = 1e-5

COS_M = math.cos(ANGULAR_MARGIN)
SIN_M = math.sin(ANGULAR_MARGIN)


def arcface_head_kernel(
    pooled_ref,    # [B, 2048]   f32  avg-pooled layer4 features
    labels_ref,    # [B, 1]      i32  ground-truth class ids
    fc1_w_ref,     # [2048, 512] bf16 fc_1 weight with bn_2 / bn_3 folded in
    fc1_b_ref,     # [1, 512]    f32  fc_1 bias with bn_2 / bn_3 folded in
    emb_w_ref,     # [512, NC]   bf16 weight-normed embedding weight / weight_g
    out_ref,       # [B, NC]     f32  log-probabilities
):
    # ---- bn_2 -> dropout(eval: identity) -> fc_1 -> bn_3, folded into one GEMM ----
    x = jnp.dot(pooled_ref[...].astype(jnp.bfloat16), fc1_w_ref[...],
                preferred_element_type=jnp.float32) + fc1_b_ref[...]

    # ---- L2 normalize (torch.norm(dim=1, keepdim=True); no eps, as in torch) ----
    inv_norm = lax.rsqrt(jnp.sum(x * x, axis=-1, keepdims=True))
    xn = x * inv_norm

    # ---- weight-normed linear / weight_g (g folded into the weight) == cos(theta) ----
    cos_t = jnp.dot(xn.astype(jnp.bfloat16), emb_w_ref[...],
                    preferred_element_type=jnp.float32)

    # ---- ArcFace margin, applied only to the ground-truth column ----
    b, nc = cos_t.shape
    col = lax.broadcasted_iota(jnp.int32, (b, nc), 1)
    is_target = col == labels_ref[...]                    # in-kernel one-hot selector
    # cos(acos(x) + m) = x*cos(m) - sqrt(1 - x^2)*sin(m)
    # torch clamps the angle to [0, pi]:  angle > pi  <=>  x < -cos(m)  ->  cos = -1
    # (the lower clamp can never bind since acos(x) >= 0 and m >= 0).
    sin_t = jnp.sqrt(jnp.maximum(1.0 - cos_t * cos_t, 0.0))
    cos_tm = cos_t * COS_M - sin_t * SIN_M
    cos_tm = jnp.where(cos_t < -COS_M, -1.0, cos_tm)
    logits = HYPER_RADIUS * jnp.where(is_target, cos_tm, cos_t)

    # ---- log_softmax(dim=-1) ----
    mx = jnp.max(logits, axis=-1, keepdims=True)
    sh = logits - mx
    lse = jnp.log(jnp.sum(jnp.exp(sh), axis=-1, keepdims=True))
    out_ref[...] = sh - lse


def _full_spec(shape):
    nd = len(shape)
    return pl.BlockSpec(shape, lambda i, _nd=nd: (0,) * _nd)


def prepare_params(params):
    """One-time parameter prep: fold eval BNs and weight_g into the GEMM weights."""
    s2 = params["bn2_gamma"] * lax.rsqrt(params["bn2_var"] + BN_EPS)   # [1, 2048]
    t2 = params["bn2_beta"] - params["bn2_mean"] * s2
    s3 = params["bn3_gamma"] * lax.rsqrt(params["bn3_var"] + BN_EPS)   # [1, 512]
    t3 = params["bn3_beta"] - params["bn3_mean"] * s3
    # ((p*s2 + t2) @ W1 + b1) * s3 + t3  ==  p @ Wf + bf
    w_f = params["fc1_w"] * s2.reshape(-1, 1) * s3.reshape(1, -1)      # [2048, 512]
    b_f = (t2 @ params["fc1_w"] + params["fc1_b"]) * s3 + t3           # [1, 512]
    w_e = params["emb_w"] / params["emb_g"]                            # [512, NC] (unit cols)
    return {
        "fc1_w": w_f.astype(jnp.bfloat16),   # bf16 halves the dominant HBM stream
        "fc1_b": b_f.astype(jnp.float32),
        "emb_w": w_e.astype(jnp.bfloat16),
    }


def arcface_forward(feat_nchw, labels, folded, num_class):
    B = feat_nchw.shape[0]
    # AdaptiveAvgPool2d((1,1)) + flatten done in the wrapper directly on NCHW:
    # no transpose op, and the kernel's feature input shrinks to [B, 2048].
    pooled = jnp.mean(feat_nchw.astype(jnp.float32), axis=(2, 3))      # [B, 2048]
    labels_col = labels.astype(jnp.int32).reshape(B, 1)                # replaces one-hot

    args = (pooled, labels_col, folded["fc1_w"], folded["fc1_b"], folded["emb_w"])

    # TODO(synk): for steady-state serving with fixed weights, keep fc1_w/emb_w
    # VMEM-resident (with_memory_space_constraint / cross-call prefetch) so the
    # per-call HBM traffic drops to ~100 KiB.
    return pl.pallas_call(
        arcface_head_kernel,
        out_shape=jax.ShapeDtypeStruct((B, num_class), jnp.float32),
        grid=(1,),
        in_specs=[_full_spec(a.shape) for a in args],
        out_specs=_full_spec((B, num_class)),
        compiler_params=pltpu.CompilerParams(
            dimension_semantics=("arbitrary",),
            vmem_limit_bytes=16 << 20,   # live set ~3 MiB; safe on v5e/v6e/v7x
        ),
    )(*args)


def reference(feat_nchw, labels, params, num_class):
    # Pure-JAX f32 reference following the PyTorch forward literally (incl. arccos).
    x = jnp.mean(feat_nchw, axis=(2, 3))
    x = (x - params["bn2_mean"]) / jnp.sqrt(params["bn2_var"] + BN_EPS) \
        * params["bn2_gamma"] + params["bn2_beta"]
    x = x @ params["fc1_w"] + params["fc1_b"]
    x = (x - params["bn3_mean"]) / jnp.sqrt(params["bn3_var"] + BN_EPS) \
        * params["bn3_gamma"] + params["bn3_beta"]
    g = jnp.linalg.norm(x, axis=1, keepdims=True)
    xn = x / g
    t = xn @ params["emb_w"] / params["emb_g"]
    mask = jax.nn.one_hot(labels, num_class, dtype=jnp.float32)
    masked = t * mask
    ang = jnp.arccos(jnp.clip(masked, -1.0, 1.0)) + ANGULAR_MARGIN * mask
    ang = jnp.clip(ang, 0.0, jnp.arccos(-1.0))
    t = t + jnp.cos(ang) - masked
    t = HYPER_RADIUS * t
    return jax.nn.log_softmax(t, axis=-1)


if __name__ == "__main__":
    B, C, H, W = 8, 2048, 4, 4      # layer4 feature map (small spatial extent)
    HIDDEN = 512
    NUM_CLASS = 256

    keys = jax.random.split(jax.random.PRNGKey(0), 14)

    feat_nchw = jax.random.normal(keys[0], (B, C, H, W), jnp.float32)
    labels = jax.random.randint(keys[1], (B,), 0, NUM_CLASS)

    params = {
        # bn_2 : BatchNorm1d(2048)
        "bn2_gamma": 1.0 + 0.1 * jax.random.normal(keys[2], (1, C), jnp.float32),
        "bn2_beta": 0.1 * jax.random.normal(keys[3], (1, C), jnp.float32),
        "bn2_mean": 0.1 * jax.random.normal(keys[4], (1, C), jnp.float32),
        "bn2_var": 0.5 + jax.random.uniform(keys[5], (1, C), jnp.float32),
        # fc_1 : Linear(2048, 512)  (weight stored transposed: [in, out])
        "fc1_w": jax.random.normal(keys[6], (C, HIDDEN), jnp.float32) / math.sqrt(C),
        "fc1_b": 0.01 * jax.random.normal(keys[7], (1, HIDDEN), jnp.float32),
        # bn_3 : BatchNorm1d(512)
        "bn3_gamma": 1.0 + 0.1 * jax.random.normal(keys[8], (1, HIDDEN), jnp.float32),
        "bn3_beta": 0.1 * jax.random.normal(keys[9], (1, HIDDEN), jnp.float32),
        "bn3_mean": 0.1 * jax.random.normal(keys[10], (1, HIDDEN), jnp.float32),
        "bn3_var": 0.5 + jax.random.uniform(keys[11], (1, HIDDEN), jnp.float32),
    }

    # identity_embedding = weight_norm(Linear(512, num_class, bias=False), dim=0)
    # torch: weight_v [NC, 512], weight_g [NC, 1], weight = g * v / ||v||_row
    v = jax.random.normal(keys[12], (NUM_CLASS, HIDDEN), jnp.float32) / math.sqrt(HIDDEN)
    g = 1.0 + 0.1 * jax.random.uniform(keys[13], (NUM_CLASS, 1), jnp.float32)
    v_norm = jnp.sqrt(jnp.sum(v * v, axis=1, keepdims=True))
    w = g * v / v_norm
    params["emb_w"] = jnp.transpose(w)            # [512, NUM_CLASS]
    params["emb_g"] = jnp.reshape(g, (1, NUM_CLASS))

    folded = prepare_params(params)               # one-time weight prep (BN/g folding + bf16)

    out = arcface_forward(feat_nchw, labels, folded, NUM_CLASS)
    out = jax.block_until_ready(out)

    # sanity checks
    assert out.shape == (B, NUM_CLASS)
    assert bool(jnp.all(jnp.isfinite(out)))
    # log_softmax rows must exponentiate to ~1
    row_sums = jnp.sum(jnp.exp(out), axis=-1)
    assert bool(jnp.all(jnp.abs(row_sums - 1.0) < 1e-3))
    # compare against the literal PyTorch-style f32 reference; the tolerance
    # absorbs the bf16 GEMM-weight quantization recommended by the perf review
    # (typical error ~1e-2, worst-case bound ~6e-2).
    ref = reference(feat_nchw, labels, params, NUM_CLASS)
    assert bool(jnp.max(jnp.abs(out - ref)) < 1.5e-1)

    print("KERNEL_OK")
</pallas_src>

<mosaic_0001>
module attributes {stable_mosaic.version = 11 : i64} {
  func.func @arcface_head_kernel(%arg0: i32, %arg1: memref<8x2048xf32, #tpu.memory_space<vmem>>, %arg2: memref<8x1xi32, #tpu.memory_space<vmem>>, %arg3: memref<2048x512xbf16, #tpu.memory_space<vmem>>, %arg4: memref<1x512xf32, #tpu.memory_space<vmem>>, %arg5: memref<512x256xbf16, #tpu.memory_space<vmem>>, %arg6: memref<8x256xf32, #tpu.memory_space<vmem>>) attributes {dimension_semantics = [#tpu.dimension_semantics<arbitrary>], iteration_bounds = array<i64: 1>, scalar_prefetch = 0 : i64, scratch_operands = 0 : i64, tpu.core_type = #tpu.core_type<tc>, window_params = [{pipeline_mode = #tpu.pipeline_mode<synchronous>, transform_indices = @transform_0, window_bounds = array<i64: 8, 2048>}, {pipeline_mode = #tpu.pipeline_mode<synchronous>, transform_indices = @transform_1, window_bounds = array<i64: 8, 1>}, {pipeline_mode = #tpu.pipeline_mode<synchronous>, transform_indices = @transform_2, window_bounds = array<i64: 2048, 512>}, {pipeline_mode = #tpu.pipeline_mode<synchronous>, transform_indices = @transform_3, window_bounds = array<i64: 1, 512>}, {pipeline_mode = #tpu.pipeline_mode<synchronous>, transform_indices = @transform_4, window_bounds = array<i64: 512, 256>}, {pipeline_mode = #tpu.pipeline_mode<synchronous>, transform_indices = @transform_5, window_bounds = array<i64: 8, 256>}]} {
    %c0 = arith.constant 0 : index
    %c0_0 = arith.constant 0 : index
    %0 = vector.load %arg1[%c0, %c0_0] : memref<8x2048xf32, #tpu.memory_space<vmem>>, vector<8x2048xf32>
    %1 = arith.truncf %0 : vector<8x2048xf32> to vector<8x2048xbf16>
    %c0_1 = arith.constant 0 : index
    %c0_2 = arith.constant 0 : index
    %2 = vector.load %arg3[%c0_1, %c0_2] : memref<2048x512xbf16, #tpu.memory_space<vmem>>, vector<2048x512xbf16>
    %cst = arith.constant dense<0.000000e+00> : vector<8x512xf32>
    %3 = tpu.matmul %1, %2, %cst {dimension_numbers = #tpu.dot_dimension_numbers<[1], [0], [0], [1], [0, 0, 1, 1], [], []>} : vector<8x2048xbf16>, vector<2048x512xbf16>, vector<8x512xf32> -> vector<8x512xf32>
    %c0_3 = arith.constant 0 : index
    %c0_4 = arith.constant 0 : index
    %4 = vector.load %arg4[%c0_3, %c0_4] : memref<1x512xf32, #tpu.memory_space<vmem>>, vector<1x512xf32>
    %5 = vector.broadcast %4 : vector<1x512xf32> to vector<8x512xf32>
    %6 = arith.addf %3, %5 : vector<8x512xf32>
    %7 = arith.mulf %6, %6 : vector<8x512xf32>
    %cst_5 = arith.constant dense<0.000000e+00> : vector<8xf32>
    %8 = vector.multi_reduction <add>, %7, %cst_5 [1] : vector<8x512xf32> to vector<8xf32>
    %9 = vector.shape_cast %8 : vector<8xf32> to vector<8x1xf32>
    %10 = math.rsqrt %9 : vector<8x1xf32>
    %11 = vector.broadcast %10 : vector<8x1xf32> to vector<8x512xf32>
    %12 = arith.mulf %6, %11 : vector<8x512xf32>
    %13 = arith.truncf %12 : vector<8x512xf32> to vector<8x512xbf16>
    %c0_6 = arith.constant 0 : index
    %c0_7 = arith.constant 0 : index
    %14 = vector.load %arg5[%c0_6, %c0_7] : memref<512x256xbf16, #tpu.memory_space<vmem>>, vector<512x256xbf16>
    %cst_8 = arith.constant dense<0.000000e+00> : vector<8x256xf32>
    %15 = tpu.matmul %13, %14, %cst_8 {dimension_numbers = #tpu.dot_dimension_numbers<[1], [0], [0], [1], [0, 0, 1, 1], [], []>} : vector<8x512xbf16>, vector<512x256xbf16>, vector<8x256xf32> -> vector<8x256xf32>
    %16 = tpu.iota {dimensions = array<i32: 1>} : vector<8x256xi32>
    %c0_9 = arith.constant 0 : index
    %c0_10 = arith.constant 0 : index
    %17 = vector.load %arg2[%c0_9, %c0_10] : memref<8x1xi32, #tpu.memory_space<vmem>>, vector<8x1xi32>
    %18 = vector.broadcast %17 : vector<8x1xi32> to vector<8x256xi32>
    %19 = arith.cmpi eq, %16, %18 : vector<8x256xi32>
    %20 = arith.mulf %15, %15 : vector<8x256xf32>
    %cst_11 = arith.constant 1.000000e+00 : f32
    %21 = vector.broadcast %cst_11 : f32 to vector<8x256xf32>
    %22 = arith.subf %21, %20 : vector<8x256xf32>
    %cst_12 = arith.constant 0.000000e+00 : f32
    %23 = vector.broadcast %cst_12 : f32 to vector<8x256xf32>
    %24 = arith.maximumf %22, %23 : vector<8x256xf32>
    %25 = math.sqrt %24 : vector<8x256xf32>
    %cst_13 = arith.constant 0.980066597 : f32
    %26 = vector.broadcast %cst_13 : f32 to vector<8x256xf32>
    %27 = arith.mulf %15, %26 : vector<8x256xf32>
    %cst_14 = arith.constant 0.198669329 : f32
    %28 = vector.broadcast %cst_14 : f32 to vector<8x256xf32>
    %29 = arith.mulf %25, %28 : vector<8x256xf32>
    %30 = arith.subf %27, %29 : vector<8x256xf32>
    %cst_15 = arith.constant -0.980066597 : f32
    %31 = vector.broadcast %cst_15 : f32 to vector<8x256xf32>
    %32 = arith.cmpf olt, %15, %31 : vector<8x256xf32>
    %cst_16 = arith.constant -1.000000e+00 : f32
    %33 = vector.broadcast %cst_16 : f32 to vector<8x256xf32>
    %34 = arith.select %32, %33, %30 : vector<8x256xi1>, vector<8x256xf32>
    %35 = arith.select %19, %34, %15 : vector<8x256xi1>, vector<8x256xf32>
    %cst_17 = arith.constant 6.400000e+01 : f32
    %36 = vector.broadcast %cst_17 : f32 to vector<8x256xf32>
    %37 = arith.mulf %36, %35 : vector<8x256xf32>
    %cst_18 = arith.constant dense<0xFF800000> : vector<8xf32>
    %38 = vector.multi_reduction <maximumf>, %37, %cst_18 [1] : vector<8x256xf32> to vector<8xf32>
    %39 = vector.shape_cast %38 : vector<8xf32> to vector<8x1xf32>
    %40 = vector.broadcast %39 : vector<8x1xf32> to vector<8x256xf32>
    %41 = arith.subf %37, %40 : vector<8x256xf32>
    %42 = math.exp %41 : vector<8x256xf32>
    %cst_19 = arith.constant dense<0.000000e+00> : vector<8xf32>
    %43 = vector.multi_reduction <add>, %42, %cst_19 [1] : vector<8x256xf32> to vector<8xf32>
    %44 = vector.shape_cast %43 : vector<8xf32> to vector<8x1xf32>
    %45 = math.log %44 : vector<8x1xf32>
    %46 = vector.broadcast %45 : vector<8x1xf32> to vector<8x256xf32>
    %47 = arith.subf %41, %46 : vector<8x256xf32>
    %c0_20 = arith.constant 0 : index
    %c0_21 = arith.constant 0 : index
    %48 = vector.load %arg6[%c0_20, %c0_21] : memref<8x256xf32, #tpu.memory_space<vmem>>, vector<8x256xf32>
    tpu.vector_store %arg6[%c0_20, %c0_21], %47 {strides = array<i32>} : memref<8x256xf32, #tpu.memory_space<vmem>>, vector<8x256xf32>,
    return
  }
  func.func @transform_0(%arg0: i32) -> (i32, i32) {
    %c0_i32 = arith.constant 0 : i32
    %c0_i32_0 = arith.constant 0 : i32
    %c0_i32_1 = arith.constant 0 : i32
    return %c0_i32, %c0_i32_0 : i32, i32
  }
  func.func @transform_1(%arg0: i32) -> (i32, i32) {
    %c0_i32 = arith.constant 0 : i32
    %c0_i32_0 = arith.constant 0 : i32
    %c0_i32_1 = arith.constant 0 : i32
    return %c0_i32, %c0_i32_0 : i32, i32
  }
  func.func @transform_2(%arg0: i32) -> (i32, i32) {
    %c0_i32 = arith.constant 0 : i32
    %c0_i32_0 = arith.constant 0 : i32
    %c0_i32_1 = arith.constant 0 : i32
    return %c0_i32, %c0_i32_0 : i32, i32
  }
  func.func @transform_3(%arg0: i32) -> (i32, i32) {
    %c0_i32 = arith.constant 0 : i32
    %c0_i32_0 = arith.constant 0 : i32
    %c0_i32_1 = arith.constant 0 : i32
    return %c0_i32, %c0_i32_0 : i32, i32
  }
  func.func @transform_4(%arg0: i32) -> (i32, i32) {
    %c0_i32 = arith.constant 0 : i32
    %c0_i32_0 = arith.constant 0 : i32
    %c0_i32_1 = arith.constant 0 : i32
    return %c0_i32, %c0_i32_0 : i32, i32
  }
  func.func @transform_5(%arg0: i32) -> (i32, i32) {
    %c0_i32 = arith.constant 0 : i32
    %c0_i32_0 = arith.constant 0 : i32
    %c0_i32_1 = arith.constant 0 : i32
    return %c0_i32, %c0_i32_0 : i32, i32
  }
}

</mosaic_0001>

<bundles_post_ra>
// kernel: tpu_custom_call.1
= control target key start
LH: loop header
LB: loop body
LE: loop exit
PB: predicated region body
PF: predicated region fallthrough
CT: control target
= control target key end

     0   :  { %10 = vsyncpa [#allocation3], 0  ;;  %s6267_s0 = inlined_call_operand.hbm [shape: f32[8,2048], index: 0, kind: input, shape index: {}]   ;;  %s6268_s1 = inlined_call_operand.vmem [shape: s32[8,1], index: 1, kind: input, shape index: {}]   ;;  %s6269_s2 = inlined_call_operand.hbm [shape: bf16[2048,512], index: 2, kind: input, shape index: {}]   ;;  %s6270_s3 = inlined_call_operand.hbm [shape: f32[1,512], index: 3, kind: input, shape index: {}]   ;;  %s6271_s4 = inlined_call_operand.hbm [shape: bf16[512,256], index: 4, kind: input, shape index: {}]   ;;  %s6272_s5 = inlined_call_operand.hbm [shape: f32[8,256], index: 5, kind: output, shape index: {}]  }
   0x1   :  { %11 = vsyncpa [#allocation6], 0 }
   0x2   :  { %12 = vsyncpa [#allocation9], 0 }
   0x3   :  { %13 = vsyncpa [#allocation4], 0  ;;  %s6059_s18 = smov [#allocation5]   ;;  %s5941_s22 = scalar_lea.hbm %s6269_s2, 65536 }
   0x4   :  { %s31_s19 = sshll.u32 %s6059_s18, 4  ;;  %p5942_p0 = scmp.ne.s32.totalorder %s6269_s2, %s5941_s22  ;;  %s32_s19 = int_to_ptr.vmem [resolvable:$true] %s31_s19 }
   0x5   :  { %p5945_p1 = scmp.lt.u32.totalorder %s5941_s22, %s6269_s2 }
   0x7   :  { %p5947_p2 = pnand %p5945_p1, %p5942_p0 }
   0x9   :  { %5950 = shalt.err (!%p5947_p2)
}
   0xa   :  { %s5951_s27 = scalar_lea.vmem %s32_s19, 65536  ;;  %p5956_p4 = scmp.lt.s32.totalorder %s32_s19, %s32_s19 }
   0xb   :  { %p5952_p3 = scmp.ne.s32.totalorder %s32_s19, %s5951_s27  ;;  %p5957_p5 = scmp.lt.s32.totalorder %s5951_s27, %s5951_s27 }
   0xd   :  { %p5958_p6 = por %p5957_p5, %p5956_p4 }
   0xf   :  { %p5959_p7 = pnand %p5958_p6, %p5952_p3 }
  0x11   :  { %5962 = shalt.err (!%p5959_p7)
}
  0x12   :  { %s6060_s28 = smov 256   ;;  %s6061_s29 = smov 16  }
  0x13   :  { %37 = dma.hbm_to_vmem [thread:$0]  %s6269_s2, 65536, %s32_s19, [#allocation6], %s6060_s28, %s6060_s28, %s6061_s29  }
  0x14   :  { %s6062_s7 = smov [#allocation2]   ;;  %s6063_s9 = smov [#allocation7]  }
  0x15   :  { %s20_s8 = sshll.u32 %s6062_s7, 4  ;;  %s44_s10 = sshll.u32 %s6063_s9, 4  ;;  %s21_s8 = int_to_ptr.vmem [resolvable:$true] %s20_s8  ;;  %s45_s10 = int_to_ptr.vmem [resolvable:$true] %s44_s10 }
  0x16   :  { %s5963_s13 = scalar_lea.hbm %s6267_s0, 2048 }
  0x17   :  { %p5964_p8 = scmp.ne.s32.totalorder %s6267_s0, %s5963_s13  ;;  %p5967_p9 = scmp.lt.u32.totalorder %s5963_s13, %s6267_s0 }
  0x19   :  { %p5969_p10 = pnand %p5967_p9, %p5964_p8 }
  0x1b   :  { %5972 = shalt.err (!%p5969_p10)
}
  0x1c   :  { %s5973_s2 = scalar_lea.vmem %s21_s8, 2048  ;;  %p5978_p12 = scmp.lt.s32.totalorder %s21_s8, %s21_s8 }
  0x1d   :  { %p5974_p11 = scmp.ne.s32.totalorder %s21_s8, %s5973_s2  ;;  %p5979_p13 = scmp.lt.s32.totalorder %s5973_s2, %s5973_s2 }
  0x1f   :  { %p5980_p0 = por %p5979_p13, %p5978_p12 }
  0x21   :  { %p5981_p1 = pnand %p5980_p0, %p5974_p11 }
  0x23   :  { %5984 = shalt.err (!%p5981_p1)
}
  0x24   :  { %23 = dma.hbm_to_vmem [thread:$0]  %s6267_s0, 2048, %s21_s8, [#allocation3]  }
  0x25   :  { %s5985_s22 = scalar_lea.hbm %s6270_s3, 64 }
  0x26   :  { %p5986_p2 = scmp.ne.s32.totalorder %s6270_s3, %s5985_s22  ;;  %p5989_p3 = scmp.lt.u32.totalorder %s5985_s22, %s6270_s3 }
  0x28   :  { %p5991_p4 = pnand %p5989_p3, %p5986_p2 }
  0x2a   :  { %5994 = shalt.err (!%p5991_p4)
}
  0x2b   :  { %s5995_s27 = scalar_lea.vmem %s45_s10, 64  ;;  %p6000_p6 = scmp.lt.s32.totalorder %s45_s10, %s45_s10 }
  0x2c   :  { %p5996_p5 = scmp.ne.s32.totalorder %s45_s10, %s5995_s27  ;;  %p6001_p7 = scmp.lt.s32.totalorder %s5995_s27, %s5995_s27 }
  0x2e   :  { %p6002_p8 = por %p6001_p7, %p6000_p6 }
  0x30   :  { %p6003_p9 = pnand %p6002_p8, %p5996_p5 }
  0x32   :  { %6006 = shalt.err (!%p6003_p9)
}
  0x33   :  { %47 = dma.hbm_to_vmem [thread:$0]  %s6270_s3, 64, %s45_s10, [#allocation6]  }
  0x34   :  { %s6064_s29 = smov [#allocation8]   ;;  %s6007_s8 = scalar_lea.hbm %s6271_s4, 8192 }
  0x35   :  { %s53_s30 = sshll.u32 %s6064_s29, 4  ;;  %p6008_p10 = scmp.ne.s32.totalorder %s6271_s4, %s6007_s8  ;;  %s54_s30 = int_to_ptr.vmem [resolvable:$true] %s53_s30 }
  0x36   :  { %p6011_p11 = scmp.lt.u32.totalorder %s6007_s8, %s6271_s4 }
  0x38   :  { %p6013_p12 = pnand %p6011_p11, %p6008_p10 }
  0x3a   :  { %6016 = shalt.err (!%p6013_p12)
}
  0x3b   :  { %s6017_s14 = scalar_lea.vmem %s54_s30, 8192  ;;  %p6022_p0 = scmp.lt.s32.totalorder %s54_s30, %s54_s30 }
  0x3c   :  { %p6018_p13 = scmp.ne.s32.totalorder %s54_s30, %s6017_s14  ;;  %p6023_p1 = scmp.lt.s32.totalorder %s6017_s14, %s6017_s14 }
  0x3e   :  { %p6024_p2 = por %p6023_p1, %p6022_p0 }
  0x40   :  { %p6025_p3 = pnand %p6024_p2, %p6018_p13 }
  0x42   :  { %6028 = shalt.err (!%p6025_p3)
}
  0x43   :  { %s6065_s3 = smov 128   ;;  %s6066_s10 = smov 8  }
  0x44   :  { %59 = dma.hbm_to_vmem [thread:$0]  %s6271_s4, 8192, %s54_s30, [#allocation9], %s6065_s3, %s6065_s3, %s6066_s10  }
  0x45   :  { %6051 = dma.done.wait [#allocation3], 2048  }
  0x46   :  { %6052 = vsyncadd [#allocation3], 4294965248 }
  0x47   :  { %6053 = dma.done.wait [#allocation6], 65600  }
  0x48   :  { %6054 = vsyncadd [#allocation6], 4294901696 }
  0x49   :  { %6055 = dma.done.wait [#allocation9], 8192  }
  0x4a   :  { %6056 = vsyncadd [#allocation9], 4294959104  ;;  %v5065_v0 = vld [vmem:[#allocation5 + $0x4] ss:$16 sps:$4 sm:$0xff]   ;;  %v5069_v2 = vld [vmem:[#allocation5] ss:$16 sps:$4 sm:$0xff]  }
  0x4b   :  { %v5067_v1 = vld [vmem:[#allocation5 + $0x204] ss:$16 sps:$4 sm:$0xff]   ;;  %3198 = vmatprep.subr.bf16.mxu1 %v5065_v0  ;;  %v5070_v3 = vld [vmem:[#allocation5 + $0x200] ss:$16 sps:$4 sm:$0xff]   ;;  %v73_v46 = vld [vmem:[#allocation2 + $0x8] sm:$0xff] }
  0x4c   :  { %3239 = vmatprep.subr.bf16.mxu0 %v5067_v1  ;;  %v5071_v4 = vld [vmem:[#allocation5 + $0x24] ss:$16 sps:$4 sm:$0xff]   ;;  %3199 = vmatpush1.bf16.msra.mxu1 %v5069_v2  ;;  %v5075_v6 = vld [vmem:[#allocation5 + $0x20] ss:$16 sps:$4 sm:$0xff]   ;;  %v6147_v48 = vpack.c.bf16 %v73_v46, %v73_v46  ;;  %v75_v49 = vld [vmem:[#allocation2 + $0x18] sm:$0xff] }
  0x4d   :  { %3240 = vmatpush1.bf16.msra.mxu0 %v5070_v3  ;;  %v5073_v5 = vld [vmem:[#allocation5 + $0x224] ss:$16 sps:$4 sm:$0xff]   ;;  %3200 = vmatprep.subr.bf16.mxu1 %v5071_v4  ;;  %v5076_v7 = vld [vmem:[#allocation5 + $0x220] ss:$16 sps:$4 sm:$0xff]   ;;  %v6149_v52 = vpack.c.bf16 %v75_v49, %v75_v49  ;;  %v5218_v49 = vld [vmem:[#allocation5 + $0x128] ss:$16 sps:$4 sm:$0xff]  }
  0x4e   :  { %3241 = vmatprep.subr.bf16.mxu0 %v5073_v5  ;;  %v5077_v8 = vld [vmem:[#allocation5 + $0x44] ss:$16 sps:$4 sm:$0xff]   ;;  %v5081_v10 = vld [vmem:[#allocation5 + $0x40] ss:$16 sps:$4 sm:$0xff]   ;;  %3230 = vmatprep.mubr.bf16.mxu1 %v6147_v48 }
  0x4f   :  { %v5079_v9 = vld [vmem:[#allocation5 + $0x244] ss:$16 sps:$4 sm:$0xff]   ;;  %v5082_v11 = vld [vmem:[#allocation5 + $0x240] ss:$16 sps:$4 sm:$0xff]   ;;  %3271 = vmatprep.mubr.bf16.mxu0 %v6149_v52 }
  0x50   :  { %3201 = vmatpush1.bf16.msra.mxu1 %v5075_v6  ;;  %v5083_v12 = vld [vmem:[#allocation5 + $0x64] ss:$16 sps:$4 sm:$0xff]   ;;  %v5087_v14 = vld [vmem:[#allocation5 + $0x60] ss:$16 sps:$4 sm:$0xff]  }
  0x51   :  { %3242 = vmatpush1.bf16.msra.mxu0 %v5076_v7  ;;  %3202 = vmatprep.subr.bf16.mxu1 %v5077_v8  ;;  %v5085_v13 = vld [vmem:[#allocation5 + $0x264] ss:$16 sps:$4 sm:$0xff]   ;;  %v5088_v15 = vld [vmem:[#allocation5 + $0x260] ss:$16 sps:$4 sm:$0xff]   ;;  %v5166_v7 = vld [vmem:[#allocation5 + $0xc] ss:$16 sps:$4 sm:$0xff]  }
  0x52   :  { %3243 = vmatprep.subr.bf16.mxu0 %v5079_v9  ;;  %v5089_v16 = vld [vmem:[#allocation5 + $0x84] ss:$16 sps:$4 sm:$0xff]   ;;  %v5093_v18 = vld [vmem:[#allocation5 + $0x80] ss:$16 sps:$4 sm:$0xff]  }
  0x53   :  { %v5091_v17 = vld [vmem:[#allocation5 + $0x284] ss:$16 sps:$4 sm:$0xff]   ;;  %v5094_v19 = vld [vmem:[#allocation5 + $0x280] ss:$16 sps:$4 sm:$0xff]  }
  0x54   :  { %3203 = vmatpush1.bf16.msra.mxu1 %v5081_v10  ;;  %v5095_v20 = vld [vmem:[#allocation5 + $0xa4] ss:$16 sps:$4 sm:$0xff]   ;;  %v5099_v22 = vld [vmem:[#allocation5 + $0xa0] ss:$16 sps:$4 sm:$0xff]   ;;  %v5164_v10 = vld [vmem:[#allocation5 + $0x8] ss:$16 sps:$4 sm:$0xff]  }
  0x55   :  { %3244 = vmatpush1.bf16.msra.mxu0 %v5082_v11  ;;  %3204 = vmatprep.subr.bf16.mxu1 %v5083_v12  ;;  %v5097_v21 = vld [vmem:[#allocation5 + $0x2a4] ss:$16 sps:$4 sm:$0xff]   ;;  %v5100_v23 = vld [vmem:[#allocation5 + $0x2a0] ss:$16 sps:$4 sm:$0xff]  }
  0x56   :  { %3245 = vmatprep.subr.bf16.mxu0 %v5085_v13  ;;  %v5101_v24 = vld [vmem:[#allocation5 + $0xc4] ss:$16 sps:$4 sm:$0xff]   ;;  %v5105_v26 = vld [vmem:[#allocation5 + $0xc0] ss:$16 sps:$4 sm:$0xff]   ;;  %v5172_v13 = vld [vmem:[#allocation5 + $0x2c] ss:$16 sps:$4 sm:$0xff]  }
  0x57   :  { %v5103_v25 = vld [vmem:[#allocation5 + $0x2c4] ss:$16 sps:$4 sm:$0xff]   ;;  %v5106_v27 = vld [vmem:[#allocation5 + $0x2c0] ss:$16 sps:$4 sm:$0xff]  }
  0x58   :  { %3205 = vmatpush1.bf16.msra.mxu1 %v5087_v14  ;;  %v5107_v28 = vld [vmem:[#allocation5 + $0xe4] ss:$16 sps:$4 sm:$0xff]   ;;  %v5111_v30 = vld [vmem:[#allocation5 + $0xe0] ss:$16 sps:$4 sm:$0xff]  }
  0x59   :  { %3246 = vmatpush1.bf16.msra.mxu0 %v5088_v15  ;;  %3206 = vmatprep.subr.bf16.mxu1 %v5089_v16  ;;  %v5109_v29 = vld [vmem:[#allocation5 + $0x2e4] ss:$16 sps:$4 sm:$0xff]   ;;  %v5112_v31 = vld [vmem:[#allocation5 + $0x2e0] ss:$16 sps:$4 sm:$0xff]   ;;  %v5170_v15 = vld [vmem:[#allocation5 + $0x28] ss:$16 sps:$4 sm:$0xff]  }
  0x5a   :  { %3247 = vmatprep.subr.bf16.mxu0 %v5091_v17  ;;  %v5113_v32 = vld [vmem:[#allocation5 + $0x104] ss:$16 sps:$4 sm:$0xff]   ;;  %v5117_v34 = vld [vmem:[#allocation5 + $0x100] ss:$16 sps:$4 sm:$0xff]   ;;  %v5178_v17 = vld [vmem:[#allocation5 + $0x4c] ss:$16 sps:$4 sm:$0xff]  }
  0x5b   :  { %v5115_v33 = vld [vmem:[#allocation5 + $0x304] ss:$16 sps:$4 sm:$0xff]   ;;  %v5118_v35 = vld [vmem:[#allocation5 + $0x300] ss:$16 sps:$4 sm:$0xff]  }
  0x5c   :  { %3207 = vmatpush1.bf16.msra.mxu1 %v5093_v18  ;;  %v5119_v36 = vld [vmem:[#allocation5 + $0x124] ss:$16 sps:$4 sm:$0xff]   ;;  %v5123_v38 = vld [vmem:[#allocation5 + $0x120] ss:$16 sps:$4 sm:$0xff]  }
  0x5d   :  { %3248 = vmatpush1.bf16.msra.mxu0 %v5094_v19  ;;  %3208 = vmatprep.subr.bf16.mxu1 %v5095_v20  ;;  %v5121_v37 = vld [vmem:[#allocation5 + $0x324] ss:$16 sps:$4 sm:$0xff]   ;;  %v5124_v39 = vld [vmem:[#allocation5 + $0x320] ss:$16 sps:$4 sm:$0xff]   ;;  %v5176_v19 = vld [vmem:[#allocation5 + $0x48] ss:$16 sps:$4 sm:$0xff]  }
  0x5e   :  { %3249 = vmatprep.subr.bf16.mxu0 %v5097_v21  ;;  %v5125_v40 = vld [vmem:[#allocation5 + $0x144] ss:$16 sps:$4 sm:$0xff]   ;;  %v5129_v42 = vld [vmem:[#allocation5 + $0x140] ss:$16 sps:$4 sm:$0xff]   ;;  %v5184_v21 = vld [vmem:[#allocation5 + $0x6c] ss:$16 sps:$4 sm:$0xff]  }
  0x5f   :  { %v5127_v41 = vld [vmem:[#allocation5 + $0x344] ss:$16 sps:$4 sm:$0xff]   ;;  %v5130_v43 = vld [vmem:[#allocation5 + $0x340] ss:$16 sps:$4 sm:$0xff]  }
  0x60   :  { %3209 = vmatpush1.bf16.msra.mxu1 %v5099_v22  ;;  %v5131_v44 = vld [vmem:[#allocation5 + $0x164] ss:$16 sps:$4 sm:$0xff]   ;;  %v5135_v47 = vld [vmem:[#allocation5 + $0x160] ss:$16 sps:$4 sm:$0xff]  }
  0x61   :  { %3250 = vmatpush1.bf16.msra.mxu0 %v5100_v23  ;;  %3210 = vmatprep.subr.bf16.mxu1 %v5101_v24  ;;  %v5133_v45 = vld [vmem:[#allocation5 + $0x364] ss:$16 sps:$4 sm:$0xff]   ;;  %v5136_v50 = vld [vmem:[#allocation5 + $0x360] ss:$16 sps:$4 sm:$0xff]   ;;  %v5182_v23 = vld [vmem:[#allocation5 + $0x68] ss:$16 sps:$4 sm:$0xff]  }
  0x62   :  { %3251 = vmatprep.subr.bf16.mxu0 %v5103_v25  ;;  %v5137_v51 = vld [vmem:[#allocation5 + $0x184] ss:$16 sps:$4 sm:$0xff]   ;;  %v5141_v54 = vld [vmem:[#allocation5 + $0x180] ss:$16 sps:$4 sm:$0xff]   ;;  %v5190_v25 = vld [vmem:[#allocation5 + $0x8c] ss:$16 sps:$4 sm:$0xff]  }
  0x63   :  { %v5139_v53 = vld [vmem:[#allocation5 + $0x384] ss:$16 sps:$4 sm:$0xff]   ;;  %v5142_v55 = vld [vmem:[#allocation5 + $0x380] ss:$16 sps:$4 sm:$0xff]  }
  0x64   :  { %3211 = vmatpush1.bf16.msra.mxu1 %v5105_v26  ;;  %v5143_v56 = vld [vmem:[#allocation5 + $0x1a4] ss:$16 sps:$4 sm:$0xff]   ;;  %v5147_v58 = vld [vmem:[#allocation5 + $0x1a0] ss:$16 sps:$4 sm:$0xff]  }
  0x65   :  { %3252 = vmatpush1.bf16.msra.mxu0 %v5106_v27  ;;  %3212 = vmatprep.subr.bf16.mxu1 %v5107_v28  ;;  %v5145_v57 = vld [vmem:[#allocation5 + $0x3a4] ss:$16 sps:$4 sm:$0xff]   ;;  %v5148_v59 = vld [vmem:[#allocation5 + $0x3a0] ss:$16 sps:$4 sm:$0xff]   ;;  %v5188_v27 = vld [vmem:[#allocation5 + $0x88] ss:$16 sps:$4 sm:$0xff]  }
  0x66   :  { %3253 = vmatprep.subr.bf16.mxu0 %v5109_v29  ;;  %v5149_v60 = vld [vmem:[#allocation5 + $0x1c4] ss:$16 sps:$4 sm:$0xff]   ;;  %v5153_v62 = vld [vmem:[#allocation5 + $0x1c0] ss:$16 sps:$4 sm:$0xff]   ;;  %v5196_v29 = vld [vmem:[#allocation5 + $0xac] ss:$16 sps:$4 sm:$0xff]  }
  0x67   :  { %v5151_v61 = vld [vmem:[#allocation5 + $0x3c4] ss:$16 sps:$4 sm:$0xff]   ;;  %v5154_v63 = vld [vmem:[#allocation5 + $0x3c0] ss:$16 sps:$4 sm:$0xff]  }
  0x68   :  { %3213 = vmatpush1.bf16.msra.mxu1 %v5111_v30  ;;  %v5155_v0 = vld [vmem:[#allocation5 + $0x1e4] ss:$16 sps:$4 sm:$0xff]   ;;  %v5159_v2 = vld [vmem:[#allocation5 + $0x1e0] ss:$16 sps:$4 sm:$0xff]  }
  0x69   :  { %3254 = vmatpush1.bf16.msra.mxu0 %v5112_v31  ;;  %3214 = vmatprep.subr.bf16.mxu1 %v5113_v32  ;;  %v5157_v1 = vld [vmem:[#allocation5 + $0x3e4] ss:$16 sps:$4 sm:$0xff]   ;;  %v5160_v3 = vld [vmem:[#allocation5 + $0x3e0] ss:$16 sps:$4 sm:$0xff]   ;;  %v5194_v31 = vld [vmem:[#allocation5 + $0xa8] ss:$16 sps:$4 sm:$0xff]  }
  0x6a   :  { %3255 = vmatprep.subr.bf16.mxu0 %v5115_v33  ;;  %v72_v4 = vld [vmem:[#allocation2] sm:$0xff]  ;;  %v74_v6 = vld [vmem:[#allocation2 + $0x10] sm:$0xff]  ;;  %v5202_v33 = vld [vmem:[#allocation5 + $0xcc] ss:$16 sps:$4 sm:$0xff]  }
  0x6b   :  { %v5163_v5 = vld [vmem:[#allocation5 + $0x404] ss:$16 sps:$4 sm:$0xff]   ;;  %v6153_v8 = vpack.c.bf16 %v72_v4, %v72_v4  ;;  %v5161_v9 = vld [vmem:[#allocation5 + $0x400] ss:$16 sps:$4 sm:$0xff]   ;;  %v6155_v11 = vpack.c.bf16 %v74_v6, %v74_v6  ;;  %v5250_v4 = vld [vmem:[#allocation5 + $0x1cc] ss:$16 sps:$4 sm:$0xff]  }
  0x6c   :  { %3215 = vmatpush1.bf16.msra.mxu1 %v5117_v34  ;;  %v5169_v12 = vld [vmem:[#allocation5 + $0x424] ss:$16 sps:$4 sm:$0xff]   ;;  %v5167_v14 = vld [vmem:[#allocation5 + $0x420] ss:$16 sps:$4 sm:$0xff]   ;;  %v77_v34 = vld [vmem:[#allocation2 + $0x28] sm:$0xff] }
  0x6d   :  { %3256 = vmatpush1.bf16.msra.mxu0 %v5118_v35  ;;  %3216 = vmatprep.subr.bf16.mxu1 %v5119_v36  ;;  %v5175_v16 = vld [vmem:[#allocation5 + $0x444] ss:$16 sps:$4 sm:$0xff]   ;;  %v5173_v18 = vld [vmem:[#allocation5 + $0x440] ss:$16 sps:$4 sm:$0xff]   ;;  %v6160_v36 = vpack.c.bf16 %v77_v34, %v77_v34  ;;  %v5248_v6 = vld [vmem:[#allocation5 + $0x1c8] ss:$16 sps:$4 sm:$0xff]  }
  0x6e   :  { %3257 = vmatprep.subr.bf16.mxu0 %v5121_v37  ;;  %v5181_v20 = vld [vmem:[#allocation5 + $0x464] ss:$16 sps:$4 sm:$0xff]   ;;  %v5179_v22 = vld [vmem:[#allocation5 + $0x460] ss:$16 sps:$4 sm:$0xff]   ;;  %v5200_v37 = vld [vmem:[#allocation5 + $0xc8] ss:$16 sps:$4 sm:$0xff]  }
  0x6f   :  { %v5187_v24 = vld [vmem:[#allocation5 + $0x484] ss:$16 sps:$4 sm:$0xff]   ;;  %v5185_v26 = vld [vmem:[#allocation5 + $0x480] ss:$16 sps:$4 sm:$0xff]  }
  0x70   :  { %3217 = vmatpush1.bf16.msra.mxu1 %v5123_v38  ;;  %v5193_v28 = vld [vmem:[#allocation5 + $0x4a4] ss:$16 sps:$4 sm:$0xff]   ;;  %v5191_v30 = vld [vmem:[#allocation5 + $0x4a0] ss:$16 sps:$4 sm:$0xff]  }
  0x71   :  { %3258 = vmatpush1.bf16.msra.mxu0 %v5124_v39  ;;  %3218 = vmatprep.subr.bf16.mxu1 %v5125_v40  ;;  %v5199_v32 = vld [vmem:[#allocation5 + $0x4c4] ss:$16 sps:$4 sm:$0xff]   ;;  %v5197_v35 = vld [vmem:[#allocation5 + $0x4c0] ss:$16 sps:$4 sm:$0xff]   ;;  %v5208_v39 = vld [vmem:[#allocation5 + $0xec] ss:$16 sps:$4 sm:$0xff]  }
  0x72   :  { %3259 = vmatprep.subr.bf16.mxu0 %v5127_v41  ;;  %v5205_v38 = vld [vmem:[#allocation5 + $0x4e4] ss:$16 sps:$4 sm:$0xff]   ;;  %v5203_v40 = vld [vmem:[#allocation5 + $0x4e0] ss:$16 sps:$4 sm:$0xff]   ;;  %v5206_v41 = vld [vmem:[#allocation5 + $0xe8] ss:$16 sps:$4 sm:$0xff]  }
  0x73   :  { %v5217_v46 = vld [vmem:[#allocation5 + $0x524] ss:$16 sps:$4 sm:$0xff]   ;;  %v5281_v34 = vld [vmem:[#allocation5 + $0x680] ss:$16 sps:$4 sm:$0xff]  }
  0x74   :  { %3219 = vmatpush1.bf16.msra.mxu1 %v5129_v42  ;;  %v5211_v42 = vld [vmem:[#allocation5 + $0x504] ss:$16 sps:$4 sm:$0xff]  }
  0x75   :  { %3260 = vmatpush1.bf16.msra.mxu0 %v5130_v43  ;;  %3220 = vmatprep.subr.bf16.mxu1 %v5131_v44  ;;  %v5214_v43 = vld [vmem:[#allocation5 + $0x10c] ss:$16 sps:$4 sm:$0xff]   ;;  %v5209_v44 = vld [vmem:[#allocation5 + $0x500] ss:$16 sps:$4 sm:$0xff]  }
  0x76   :  { %3261 = vmatprep.subr.bf16.mxu0 %v5133_v45  ;;  %v5212_v45 = vld [vmem:[#allocation5 + $0x108] ss:$16 sps:$4 sm:$0xff]  }
  0x78   :  { %3221 = vmatpush1.bf16.msra.mxu1 %v5135_v47  ;;  %v5220_v47 = vld [vmem:[#allocation5 + $0x12c] ss:$16 sps:$4 sm:$0xff]  }
  0x79   :  { %3262 = vmatpush1.bf16.msra.mxu0 %v5136_v50  ;;  %3222 = vmatprep.subr.bf16.mxu1 %v5137_v51  ;;  %v5223_v50 = vld [vmem:[#allocation5 + $0x544] ss:$16 sps:$4 sm:$0xff]   ;;  %v5226_v51 = vld [vmem:[#allocation5 + $0x14c] ss:$16 sps:$4 sm:$0xff]  }
  0x7a   :  { %3263 = vmatprep.subr.bf16.mxu0 %v5139_v53  ;;  %v5221_v53 = vld [vmem:[#allocation5 + $0x540] ss:$16 sps:$4 sm:$0xff]  }
  0x7c   :  { %3223 = vmatpush1.bf16.msra.mxu1 %v5141_v54  ;;  %v5224_v54 = vld [vmem:[#allocation5 + $0x148] ss:$16 sps:$4 sm:$0xff]  }
  0x7d   :  { %3264 = vmatpush1.bf16.msra.mxu0 %v5142_v55  ;;  %3224 = vmatprep.subr.bf16.mxu1 %v5143_v56  ;;  %v5229_v55 = vld [vmem:[#allocation5 + $0x564] ss:$16 sps:$4 sm:$0xff]   ;;  %v5232_v56 = vld [vmem:[#allocation5 + $0x16c] ss:$16 sps:$4 sm:$0xff]  }
  0x7e   :  { %3265 = vmatprep.subr.bf16.mxu0 %v5145_v57  ;;  %v5227_v57 = vld [vmem:[#allocation5 + $0x560] ss:$16 sps:$4 sm:$0xff]  }
  0x80   :  { %3225 = vmatpush1.bf16.msra.mxu1 %v5147_v58  ;;  %v5230_v58 = vld [vmem:[#allocation5 + $0x168] ss:$16 sps:$4 sm:$0xff]  }
  0x81   :  { %3266 = vmatpush1.bf16.msra.mxu0 %v5148_v59  ;;  %3226 = vmatprep.subr.bf16.mxu1 %v5149_v60  ;;  %v5235_v59 = vld [vmem:[#allocation5 + $0x584] ss:$16 sps:$4 sm:$0xff]   ;;  %v5238_v60 = vld [vmem:[#allocation5 + $0x18c] ss:$16 sps:$4 sm:$0xff]  }
  0x82   :  { %3267 = vmatprep.subr.bf16.mxu0 %v5151_v61  ;;  %v5233_v61 = vld [vmem:[#allocation5 + $0x580] ss:$16 sps:$4 sm:$0xff]  }
  0x84   :  { %3227 = vmatpush1.bf16.msra.mxu1 %v5153_v62  ;;  %v5236_v62 = vld [vmem:[#allocation5 + $0x188] ss:$16 sps:$4 sm:$0xff]  }
  0x85   :  { %3268 = vmatpush1.bf16.msra.mxu0 %v5154_v63  ;;  %3228 = vmatprep.subr.bf16.mxu1 %v5155_v0  ;;  %v5241_v63 = vld [vmem:[#allocation5 + $0x5a4] ss:$16 sps:$4 sm:$0xff]   ;;  %v5244_v0 = vld [vmem:[#allocation5 + $0x1ac] ss:$16 sps:$4 sm:$0xff]  }
  0x86   :  { %3269 = vmatprep.subr.bf16.mxu0 %v5157_v1  ;;  %v5239_v1 = vld [vmem:[#allocation5 + $0x5a0] ss:$16 sps:$4 sm:$0xff]  }
  0x88   :  { %3229 = vmatpush1.bf16.msra.mxu1 %v5159_v2  ;;  %v5242_v2 = vld [vmem:[#allocation5 + $0x1a8] ss:$16 sps:$4 sm:$0xff]  }
  0x89   :  { %3270 = vmatpush1.bf16.msra.mxu0 %v5160_v3  ;;  %3526 = vmatprep.subr.bf16.mxu1 %v5166_v7  ;;  %v5247_v3 = vld [vmem:[#allocation5 + $0x5c4] ss:$16 sps:$4 sm:$0xff]  }
  0x8a   :  { %3280 = vmatprep.subr.bf16.mxu0 %v5163_v5  ;;  %v5245_v5 = vld [vmem:[#allocation5 + $0x5c0] ss:$16 sps:$4 sm:$0xff]   ;;  %v5253_v7 = vld [vmem:[#allocation5 + $0x5e4] ss:$16 sps:$4 sm:$0xff]  }
  0x8b   :  { %3231 = vmatmul.mubr.bf16.vlgmr.msra.gmra.mrb[0].mxu1 %v6153_v8 }
  0x8c   :  { %3272 = vmatmul.mubr.bf16.vlgmr.msra.gmra.mrb[0].mxu0 %v6155_v11  ;;  %3527 = vmatpush1.bf16.msra.mxu1 %v5164_v10  ;;  %v5251_v10 = vld [vmem:[#allocation5 + $0x5e0] ss:$16 sps:$4 sm:$0xff]  }
  0x8d   :  { %3281 = vmatpush1.bf16.msra.mxu0 %v5161_v9  ;;  %3528 = vmatprep.subr.bf16.mxu1 %v5172_v13  ;;  %v5256_v9 = vld [vmem:[#allocation5 + $0x1ec] ss:$16 sps:$4 sm:$0xff]   ;;  %v76_v13 = vld [vmem:[#allocation2 + $0x20] sm:$0xff] }
  0x8e   :  { %3282 = vmatprep.subr.bf16.mxu0 %v5169_v12  ;;  %3558 = vmatprep.mubr.bf16.mxu1 %v6147_v48  ;;  %v5215_v48 = vld [vmem:[#allocation5 + $0x520] ss:$16 sps:$4 sm:$0xff]   ;;  %v5254_v12 = vld [vmem:[#allocation5 + $0x1e8] ss:$16 sps:$4 sm:$0xff]  }
  0x8f   :  { %3312 = vmatprep.mubr.bf16.mxu0 %v6160_v36 }
  0x90   :  { %3529 = vmatpush1.bf16.msra.mxu1 %v5170_v15  ;;  %v5262_v15 = vld [vmem:[#allocation5 + $0x20c] ss:$16 sps:$4 sm:$0xff]  }
  0x91   :  { %3283 = vmatpush1.bf16.msra.mxu0 %v5167_v14  ;;  %3530 = vmatprep.subr.bf16.mxu1 %v5178_v17  ;;  %v5259_v14 = vld [vmem:[#allocation5 + $0x604] ss:$16 sps:$4 sm:$0xff]   ;;  %v5257_v17 = vld [vmem:[#allocation5 + $0x600] ss:$16 sps:$4 sm:$0xff]  }
  0x92   :  { %3284 = vmatprep.subr.bf16.mxu0 %v5175_v16  ;;  %v6163_v16 = vpack.c.bf16 %v76_v13, %v76_v13  ;;  %v5341_v13 = vld [vmem:[#allocation5 + $0x7c0] ss:$16 sps:$4 sm:$0xff]  }
  0x94   :  { %3531 = vmatpush1.bf16.msra.mxu1 %v5176_v19  ;;  %v5265_v19 = vld [vmem:[#allocation5 + $0x624] ss:$16 sps:$4 sm:$0xff]  }
  0x95   :  { %3285 = vmatpush1.bf16.msra.mxu0 %v5173_v18  ;;  %3532 = vmatprep.subr.bf16.mxu1 %v5184_v21  ;;  %v5260_v18 = vld [vmem:[#allocation5 + $0x208] ss:$16 sps:$4 sm:$0xff]  }
  0x96   :  { %3286 = vmatprep.subr.bf16.mxu0 %v5181_v20  ;;  %v5268_v20 = vld [vmem:[#allocation5 + $0x22c] ss:$16 sps:$4 sm:$0xff]  }
  0x97   :  { %v79_v21 = vld [vmem:[#allocation2 + $0x38] sm:$0xff] }
  0x98   :  { %3533 = vmatpush1.bf16.msra.mxu1 %v5182_v23  ;;  %v6167_v23 = vpack.c.bf16 %v79_v21, %v79_v21  ;;  %v78_v21 = vld [vmem:[#allocation2 + $0x30] sm:$0xff] }
  0x99   :  { %3287 = vmatpush1.bf16.msra.mxu0 %v5179_v22  ;;  %3534 = vmatprep.subr.bf16.mxu1 %v5190_v25  ;;  %v5263_v22 = vld [vmem:[#allocation5 + $0x620] ss:$16 sps:$4 sm:$0xff]   ;;  %v5271_v25 = vld [vmem:[#allocation5 + $0x644] ss:$16 sps:$4 sm:$0xff]  }
  0x9a   :  { %3288 = vmatprep.subr.bf16.mxu0 %v5187_v24  ;;  %v5266_v24 = vld [vmem:[#allocation5 + $0x228] ss:$16 sps:$4 sm:$0xff]  }
  0x9c   :  { %3535 = vmatpush1.bf16.msra.mxu1 %v5188_v27  ;;  %v5269_v27 = vld [vmem:[#allocation5 + $0x640] ss:$16 sps:$4 sm:$0xff]  }
  0x9d   :  { %3289 = vmatpush1.bf16.msra.mxu0 %v5185_v26  ;;  %3536 = vmatprep.subr.bf16.mxu1 %v5196_v29  ;;  %v5274_v26 = vld [vmem:[#allocation5 + $0x24c] ss:$16 sps:$4 sm:$0xff]   ;;  %v5277_v29 = vld [vmem:[#allocation5 + $0x664] ss:$16 sps:$4 sm:$0xff]  }
  0x9e   :  { %3290 = vmatprep.subr.bf16.mxu0 %v5193_v28  ;;  %v5272_v28 = vld [vmem:[#allocation5 + $0x248] ss:$16 sps:$4 sm:$0xff]  }
  0xa0   :  { %3537 = vmatpush1.bf16.msra.mxu1 %v5194_v31  ;;  %v5278_v31 = vld [vmem:[#allocation5 + $0x268] ss:$16 sps:$4 sm:$0xff]  }
  0xa1   :  { %3291 = vmatpush1.bf16.msra.mxu0 %v5191_v30  ;;  %3538 = vmatprep.subr.bf16.mxu1 %v5202_v33  ;;  %v5275_v30 = vld [vmem:[#allocation5 + $0x660] ss:$16 sps:$4 sm:$0xff]   ;;  %v5286_v33 = vld [vmem:[#allocation5 + $0x28c] ss:$16 sps:$4 sm:$0xff]  }
  0xa2   :  { %3292 = vmatprep.subr.bf16.mxu0 %v5199_v32  ;;  %v5283_v32 = vld [vmem:[#allocation5 + $0x684] ss:$16 sps:$4 sm:$0xff]  }
  0xa4   :  { %3539 = vmatpush1.bf16.msra.mxu1 %v5200_v37  ;;  %v5292_v37 = vld [vmem:[#allocation5 + $0x2ac] ss:$16 sps:$4 sm:$0xff]  }
  0xa5   :  { %3293 = vmatpush1.bf16.msra.mxu0 %v5197_v35  ;;  %3540 = vmatprep.subr.bf16.mxu1 %v5208_v39  ;;  %v5284_v35 = vld [vmem:[#allocation5 + $0x288] ss:$16 sps:$4 sm:$0xff]  }
  0xa6   :  { %3294 = vmatprep.subr.bf16.mxu0 %v5205_v38  ;;  %v5287_v38 = vld [vmem:[#allocation5 + $0x6a0] ss:$16 sps:$4 sm:$0xff]   ;;  %v5290_v39 = vld [vmem:[#allocation5 + $0x2a8] ss:$16 sps:$4 sm:$0xff]  }
  0xa8   :  { %3541 = vmatpush1.bf16.msra.mxu1 %v5206_v41  ;;  %v5298_v41 = vld [vmem:[#allocation5 + $0x2cc] ss:$16 sps:$4 sm:$0xff]  }
  0xa9   :  { %3295 = vmatpush1.bf16.msra.mxu0 %v5203_v40  ;;  %3542 = vmatprep.subr.bf16.mxu1 %v5214_v43  ;;  %v5295_v40 = vld [vmem:[#allocation5 + $0x6c4] ss:$16 sps:$4 sm:$0xff]   ;;  %v5296_v43 = vld [vmem:[#allocation5 + $0x2c8] ss:$16 sps:$4 sm:$0xff]  }
  0xaa   :  { %3296 = vmatprep.subr.bf16.mxu0 %v5211_v42  ;;  %v5293_v42 = vld [vmem:[#allocation5 + $0x6c0] ss:$16 sps:$4 sm:$0xff]  }
  0xac   :  { %3543 = vmatpush1.bf16.msra.mxu1 %v5212_v45  ;;  %v5304_v45 = vld [vmem:[#allocation5 + $0x2ec] ss:$16 sps:$4 sm:$0xff]  }
  0xad   :  { %3297 = vmatpush1.bf16.msra.mxu0 %v5209_v44  ;;  %3544 = vmatprep.subr.bf16.mxu1 %v5220_v47  ;;  %v5301_v44 = vld [vmem:[#allocation5 + $0x6e4] ss:$16 sps:$4 sm:$0xff]   ;;  %v5302_v47 = vld [vmem:[#allocation5 + $0x2e8] ss:$16 sps:$4 sm:$0xff]  }
  0xae   :  { %3298 = vmatprep.subr.bf16.mxu0 %v5217_v46  ;;  %v5299_v46 = vld [vmem:[#allocation5 + $0x6e0] ss:$16 sps:$4 sm:$0xff]  }
  0xb0   :  { %3545 = vmatpush1.bf16.msra.mxu1 %v5218_v49  ;;  %v5310_v49 = vld [vmem:[#allocation5 + $0x30c] ss:$16 sps:$4 sm:$0xff]  }
  0xb1   :  { %3299 = vmatpush1.bf16.msra.mxu0 %v5215_v48  ;;  %3546 = vmatprep.subr.bf16.mxu1 %v5226_v51  ;;  %v5307_v48 = vld [vmem:[#allocation5 + $0x704] ss:$16 sps:$4 sm:$0xff]   ;;  %v5308_v51 = vld [vmem:[#allocation5 + $0x308] ss:$16 sps:$4 sm:$0xff]  }
  0xb2   :  { %3300 = vmatprep.subr.bf16.mxu0 %v5223_v50  ;;  %v5305_v50 = vld [vmem:[#allocation5 + $0x700] ss:$16 sps:$4 sm:$0xff]  }
  0xb4   :  { %3547 = vmatpush1.bf16.msra.mxu1 %v5224_v54  ;;  %v5316_v54 = vld [vmem:[#allocation5 + $0x32c] ss:$16 sps:$4 sm:$0xff]  }
  0xb5   :  { %3301 = vmatpush1.bf16.msra.mxu0 %v5221_v53  ;;  %3548 = vmatprep.subr.bf16.mxu1 %v5232_v56  ;;  %v5313_v53 = vld [vmem:[#allocation5 + $0x724] ss:$16 sps:$4 sm:$0xff]   ;;  %v5314_v56 = vld [vmem:[#allocation5 + $0x328] ss:$16 sps:$4 sm:$0xff]  }
  0xb6   :  { %3302 = vmatprep.subr.bf16.mxu0 %v5229_v55  ;;  %v5311_v55 = vld [vmem:[#allocation5 + $0x720] ss:$16 sps:$4 sm:$0xff]  }
  0xb8   :  { %3549 = vmatpush1.bf16.msra.mxu1 %v5230_v58  ;;  %v5322_v58 = vld [vmem:[#allocation5 + $0x34c] ss:$16 sps:$4 sm:$0xff]  }
  0xb9   :  { %3303 = vmatpush1.bf16.msra.mxu0 %v5227_v57  ;;  %3550 = vmatprep.subr.bf16.mxu1 %v5238_v60  ;;  %v5319_v57 = vld [vmem:[#allocation5 + $0x744] ss:$16 sps:$4 sm:$0xff]   ;;  %v5320_v60 = vld [vmem:[#allocation5 + $0x348] ss:$16 sps:$4 sm:$0xff]  }
  0xba   :  { %3304 = vmatprep.subr.bf16.mxu0 %v5235_v59  ;;  %v5317_v59 = vld [vmem:[#allocation5 + $0x740] ss:$16 sps:$4 sm:$0xff]  }
  0xbc   :  { %3551 = vmatpush1.bf16.msra.mxu1 %v5236_v62  ;;  %v5328_v62 = vld [vmem:[#allocation5 + $0x36c] ss:$16 sps:$4 sm:$0xff]  }
  0xbd   :  { %3305 = vmatpush1.bf16.msra.mxu0 %v5233_v61  ;;  %3552 = vmatprep.subr.bf16.mxu1 %v5244_v0  ;;  %v5325_v61 = vld [vmem:[#allocation5 + $0x764] ss:$16 sps:$4 sm:$0xff]   ;;  %v5326_v0 = vld [vmem:[#allocation5 + $0x368] ss:$16 sps:$4 sm:$0xff]  }
  0xbe   :  { %3306 = vmatprep.subr.bf16.mxu0 %v5241_v63  ;;  %v5323_v63 = vld [vmem:[#allocation5 + $0x760] ss:$16 sps:$4 sm:$0xff]  }
  0xc0   :  { %3553 = vmatpush1.bf16.msra.mxu1 %v5242_v2  ;;  %v5334_v2 = vld [vmem:[#allocation5 + $0x38c] ss:$16 sps:$4 sm:$0xff]  }
  0xc1   :  { %3307 = vmatpush1.bf16.msra.mxu0 %v5239_v1  ;;  %3554 = vmatprep.subr.bf16.mxu1 %v5250_v4  ;;  %v5331_v1 = vld [vmem:[#allocation5 + $0x784] ss:$16 sps:$4 sm:$0xff]   ;;  %v5332_v4 = vld [vmem:[#allocation5 + $0x388] ss:$16 sps:$4 sm:$0xff]  }
  0xc2   :  { %3308 = vmatprep.subr.bf16.mxu0 %v5247_v3  ;;  %v5329_v3 = vld [vmem:[#allocation5 + $0x780] ss:$16 sps:$4 sm:$0xff]  }
  0xc4   :  { %3555 = vmatpush1.bf16.msra.mxu1 %v5248_v6  ;;  %v5340_v6 = vld [vmem:[#allocation5 + $0x3ac] ss:$16 sps:$4 sm:$0xff]  }
  0xc5   :  { %3309 = vmatpush1.bf16.msra.mxu0 %v5245_v5  ;;  %3556 = vmatprep.subr.bf16.mxu1 %v5256_v9  ;;  %v5337_v5 = vld [vmem:[#allocation5 + $0x7a4] ss:$16 sps:$4 sm:$0xff]   ;;  %v5338_v9 = vld [vmem:[#allocation5 + $0x3a8] ss:$16 sps:$4 sm:$0xff]  }
  0xc6   :  { %3310 = vmatprep.subr.bf16.mxu0 %v5253_v7  ;;  %v5335_v7 = vld [vmem:[#allocation5 + $0x7a0] ss:$16 sps:$4 sm:$0xff]  }
  0xc8   :  { %3557 = vmatpush1.bf16.msra.mxu1 %v5254_v12  ;;  %v5346_v12 = vld [vmem:[#allocation5 + $0x3cc] ss:$16 sps:$4 sm:$0xff]  }
  0xc9   :  { %3311 = vmatpush1.bf16.msra.mxu0 %v5251_v10  ;;  %3567 = vmatprep.subr.bf16.mxu1 %v5262_v15  ;;  %v5343_v10 = vld [vmem:[#allocation5 + $0x7c4] ss:$16 sps:$4 sm:$0xff]  }
  0xca   :  { %3321 = vmatprep.subr.bf16.mxu0 %v5259_v14  ;;  %v5344_v14 = vld [vmem:[#allocation5 + $0x3c8] ss:$16 sps:$4 sm:$0xff]   ;;  %v5349_v15 = vld [vmem:[#allocation5 + $0x7e4] ss:$16 sps:$4 sm:$0xff]  }
  0xcb   :  { %3559 = vmatmul.mubr.bf16.vlgmr.msra.gmra.mrb[4].mxu1 %v6153_v8  ;;  %v5280_v8 = vld [vmem:[#allocation5 + $0x26c] ss:$16 sps:$4 sm:$0xff]  }
  0xcc   :  { %3313 = vmatmul.mubr.bf16.vlgmr.msra.gmra.mrb[0].mxu0 %v6163_v16  ;;  %3568 = vmatpush1.bf16.msra.mxu1 %v5260_v18  ;;  %v5347_v18 = vld [vmem:[#allocation5 + $0x7e0] ss:$16 sps:$4 sm:$0xff]  }
  0xcd   :  { %3322 = vmatpush1.bf16.msra.mxu0 %v5257_v17  ;;  %3569 = vmatprep.subr.bf16.mxu1 %v5268_v20  ;;  %v5352_v17 = vld [vmem:[#allocation5 + $0x3ec] ss:$16 sps:$4 sm:$0xff]   ;;  %v5355_v20 = vld [vmem:[#allocation5 + $0x804] ss:$16 sps:$4 sm:$0xff]  }
  0xce   :  { %3323 = vmatprep.subr.bf16.mxu0 %v5265_v19  ;;  %3353 = vmatprep.mubr.bf16.mxu0 %v6167_v23  ;;  %v5350_v19 = vld [vmem:[#allocation5 + $0x3e8] ss:$16 sps:$4 sm:$0xff]  }
  0xcf   :  { %3599 = vmatprep.mubr.bf16.mxu1 %v6149_v52  ;;  %v5289_v52 = vld [vmem:[#allocation5 + $0x6a4] ss:$16 sps:$4 sm:$0xff]  }
  0xd0   :  { %3570 = vmatpush1.bf16.msra.mxu1 %v5266_v24  ;;  %v5353_v24 = vld [vmem:[#allocation5 + $0x800] ss:$16 sps:$4 sm:$0xff]  }
  0xd1   :  { %3324 = vmatpush1.bf16.msra.mxu0 %v5263_v22  ;;  %3571 = vmatprep.subr.bf16.mxu1 %v5274_v26  ;;  %v5358_v22 = vld [vmem:[#allocation5 + $0x40c] ss:$16 sps:$4 sm:$0xff]  }
  0xd2   :  { %3325 = vmatprep.subr.bf16.mxu0 %v5271_v25  ;;  %v6171_v25 = vpack.c.bf16 %v78_v21, %v78_v21  ;;  %v81_v26 = vld [vmem:[#allocation2 + $0x48] sm:$0xff] }
  0xd3   :  { %v5440_v21 = vld [vmem:[#allocation5 + $0x5c8] ss:$16 sps:$4 sm:$0xff]  }
  0xd4   :  { %3572 = vmatpush1.bf16.msra.mxu1 %v5272_v28  ;;  %v5361_v28 = vld [vmem:[#allocation5 + $0x824] ss:$16 sps:$4 sm:$0xff]  }
  0xd5   :  { %3326 = vmatpush1.bf16.msra.mxu0 %v5269_v27  ;;  %3573 = vmatprep.subr.bf16.mxu1 %v5280_v8  ;;  %v5356_v27 = vld [vmem:[#allocation5 + $0x408] ss:$16 sps:$4 sm:$0xff]   ;;  %v6173_v8 = vpack.c.bf16 %v81_v26, %v81_v26  ;;  %v5443_v26 = vld [vmem:[#allocation5 + $0x9e0] ss:$16 sps:$4 sm:$0xff]  }
  0xd6   :  { %3327 = vmatprep.subr.bf16.mxu0 %v5277_v29  ;;  %v5364_v29 = vld [vmem:[#allocation5 + $0x42c] ss:$16 sps:$4 sm:$0xff]  }
  0xd8   :  { %3574 = vmatpush1.bf16.msra.mxu1 %v5278_v31  ;;  %v5362_v31 = vld [vmem:[#allocation5 + $0x428] ss:$16 sps:$4 sm:$0xff]  }
  0xd9   :  { %3328 = vmatpush1.bf16.msra.mxu0 %v5275_v30  ;;  %3575 = vmatprep.subr.bf16.mxu1 %v5286_v33  ;;  %v5359_v30 = vld [vmem:[#allocation5 + $0x820] ss:$16 sps:$4 sm:$0xff]   ;;  %v5370_v33 = vld [vmem:[#allocation5 + $0x44c] ss:$16 sps:$4 sm:$0xff]  }
  0xda   :  { %3329 = vmatprep.subr.bf16.mxu0 %v5283_v32  ;;  %v5367_v32 = vld [vmem:[#allocation5 + $0x844] ss:$16 sps:$4 sm:$0xff]  }
  0xdc   :  { %3576 = vmatpush1.bf16.msra.mxu1 %v5284_v35  ;;  %v5368_v35 = vld [vmem:[#allocation5 + $0x448] ss:$16 sps:$4 sm:$0xff]  }
  0xdd   :  { %3330 = vmatpush1.bf16.msra.mxu0 %v5281_v34  ;;  %3577 = vmatprep.subr.bf16.mxu1 %v5292_v37  ;;  %v5365_v34 = vld [vmem:[#allocation5 + $0x840] ss:$16 sps:$4 sm:$0xff]  }
  0xde   :  { %3331 = vmatprep.subr.bf16.mxu0 %v5289_v52  ;;  %v5373_v52 = vld [vmem:[#allocation5 + $0x864] ss:$16 sps:$4 sm:$0xff]   ;;  %v5371_v37 = vld [vmem:[#allocation5 + $0x860] ss:$16 sps:$4 sm:$0xff]  }
  0xe0   :  { %3578 = vmatpush1.bf16.msra.mxu1 %v5290_v39  ;;  %v5379_v39 = vld [vmem:[#allocation5 + $0x884] ss:$16 sps:$4 sm:$0xff]  }
  0xe1   :  { %3332 = vmatpush1.bf16.msra.mxu0 %v5287_v38  ;;  %3579 = vmatprep.subr.bf16.mxu1 %v5298_v41  ;;  %v5374_v38 = vld [vmem:[#allocation5 + $0x468] ss:$16 sps:$4 sm:$0xff]   ;;  %v5377_v41 = vld [vmem:[#allocation5 + $0x880] ss:$16 sps:$4 sm:$0xff]  }
  0xe2   :  { %3333 = vmatprep.subr.bf16.mxu0 %v5295_v40  ;;  %v5382_v40 = vld [vmem:[#allocation5 + $0x48c] ss:$16 sps:$4 sm:$0xff]  }
  0xe4   :  { %3580 = vmatpush1.bf16.msra.mxu1 %v5296_v43  ;;  %v5388_v43 = vld [vmem:[#allocation5 + $0x4ac] ss:$16 sps:$4 sm:$0xff]  }
  0xe5   :  { %3334 = vmatpush1.bf16.msra.mxu0 %v5293_v42  ;;  %3581 = vmatprep.subr.bf16.mxu1 %v5304_v45  ;;  %v5385_v42 = vld [vmem:[#allocation5 + $0x8a4] ss:$16 sps:$4 sm:$0xff]   ;;  %v5386_v45 = vld [vmem:[#allocation5 + $0x4a8] ss:$16 sps:$4 sm:$0xff]  }
  0xe6   :  { %3335 = vmatprep.subr.bf16.mxu0 %v5301_v44  ;;  %v5383_v44 = vld [vmem:[#allocation5 + $0x8a0] ss:$16 sps:$4 sm:$0xff]  }
  0xe8   :  { %3582 = vmatpush1.bf16.msra.mxu1 %v5302_v47  ;;  %v5394_v47 = vld [vmem:[#allocation5 + $0x4cc] ss:$16 sps:$4 sm:$0xff]  }
  0xe9   :  { %3336 = vmatpush1.bf16.msra.mxu0 %v5299_v46  ;;  %3583 = vmatprep.subr.bf16.mxu1 %v5310_v49  ;;  %v5391_v46 = vld [vmem:[#allocation5 + $0x8c4] ss:$16 sps:$4 sm:$0xff]   ;;  %v5392_v49 = vld [vmem:[#allocation5 + $0x4c8] ss:$16 sps:$4 sm:$0xff]  }
  0xea   :  { %3337 = vmatprep.subr.bf16.mxu0 %v5307_v48  ;;  %v5389_v48 = vld [vmem:[#allocation5 + $0x8c0] ss:$16 sps:$4 sm:$0xff]  }
  0xec   :  { %3584 = vmatpush1.bf16.msra.mxu1 %v5308_v51  ;;  %v5400_v51 = vld [vmem:[#allocation5 + $0x4ec] ss:$16 sps:$4 sm:$0xff]  }
  0xed   :  { %3338 = vmatpush1.bf16.msra.mxu0 %v5305_v50  ;;  %3585 = vmatprep.subr.bf16.mxu1 %v5316_v54  ;;  %v5397_v50 = vld [vmem:[#allocation5 + $0x8e4] ss:$16 sps:$4 sm:$0xff]   ;;  %v5398_v54 = vld [vmem:[#allocation5 + $0x4e8] ss:$16 sps:$4 sm:$0xff]  }
  0xee   :  { %3339 = vmatprep.subr.bf16.mxu0 %v5313_v53  ;;  %v5395_v53 = vld [vmem:[#allocation5 + $0x8e0] ss:$16 sps:$4 sm:$0xff]  }
  0xf0   :  { %3586 = vmatpush1.bf16.msra.mxu1 %v5314_v56  ;;  %v5406_v56 = vld [vmem:[#allocation5 + $0x50c] ss:$16 sps:$4 sm:$0xff]  }
  0xf1   :  { %3340 = vmatpush1.bf16.msra.mxu0 %v5311_v55  ;;  %3587 = vmatprep.subr.bf16.mxu1 %v5322_v58  ;;  %v5403_v55 = vld [vmem:[#allocation5 + $0x904] ss:$16 sps:$4 sm:$0xff]   ;;  %v5404_v58 = vld [vmem:[#allocation5 + $0x508] ss:$16 sps:$4 sm:$0xff]  }
  0xf2   :  { %3341 = vmatprep.subr.bf16.mxu0 %v5319_v57  ;;  %v5401_v57 = vld [vmem:[#allocation5 + $0x900] ss:$16 sps:$4 sm:$0xff]  }
  0xf4   :  { %3588 = vmatpush1.bf16.msra.mxu1 %v5320_v60  ;;  %v5412_v60 = vld [vmem:[#allocation5 + $0x52c] ss:$16 sps:$4 sm:$0xff]  }
  0xf5   :  { %3342 = vmatpush1.bf16.msra.mxu0 %v5317_v59  ;;  %3589 = vmatprep.subr.bf16.mxu1 %v5328_v62  ;;  %v5409_v59 = vld [vmem:[#allocation5 + $0x924] ss:$16 sps:$4 sm:$0xff]   ;;  %v5410_v62 = vld [vmem:[#allocation5 + $0x528] ss:$16 sps:$4 sm:$0xff]  }
  0xf6   :  { %3343 = vmatprep.subr.bf16.mxu0 %v5325_v61  ;;  %v5407_v61 = vld [vmem:[#allocation5 + $0x920] ss:$16 sps:$4 sm:$0xff]  }
  0xf8   :  { %3590 = vmatpush1.bf16.msra.mxu1 %v5326_v0  ;;  %v5418_v0 = vld [vmem:[#allocation5 + $0x54c] ss:$16 sps:$4 sm:$0xff]  }
  0xf9   :  { %3344 = vmatpush1.bf16.msra.mxu0 %v5323_v63  ;;  %3591 = vmatprep.subr.bf16.mxu1 %v5334_v2  ;;  %v5415_v63 = vld [vmem:[#allocation5 + $0x944] ss:$16 sps:$4 sm:$0xff]   ;;  %v5416_v2 = vld [vmem:[#allocation5 + $0x548] ss:$16 sps:$4 sm:$0xff]  }
  0xfa   :  { %3345 = vmatprep.subr.bf16.mxu0 %v5331_v1  ;;  %v5413_v1 = vld [vmem:[#allocation5 + $0x940] ss:$16 sps:$4 sm:$0xff]  }
  0xfc   :  { %3592 = vmatpush1.bf16.msra.mxu1 %v5332_v4  ;;  %v5424_v4 = vld [vmem:[#allocation5 + $0x56c] ss:$16 sps:$4 sm:$0xff]  }
  0xfd   :  { %3346 = vmatpush1.bf16.msra.mxu0 %v5329_v3  ;;  %3593 = vmatprep.subr.bf16.mxu1 %v5340_v6  ;;  %v5421_v3 = vld [vmem:[#allocation5 + $0x964] ss:$16 sps:$4 sm:$0xff]   ;;  %v5422_v6 = vld [vmem:[#allocation5 + $0x568] ss:$16 sps:$4 sm:$0xff]  }
  0xfe   :  { %3347 = vmatprep.subr.bf16.mxu0 %v5337_v5  ;;  %v5419_v5 = vld [vmem:[#allocation5 + $0x960] ss:$16 sps:$4 sm:$0xff]  }
 0x100   :  { %3594 = vmatpush1.bf16.msra.mxu1 %v5338_v9  ;;  %v5430_v9 = vld [vmem:[#allocation5 + $0x58c] ss:$16 sps:$4 sm:$0xff]  }
 0x101   :  { %3348 = vmatpush1.bf16.msra.mxu0 %v5335_v7  ;;  %3595 = vmatprep.subr.bf16.mxu1 %v5346_v12  ;;  %v5427_v7 = vld [vmem:[#allocation5 + $0x984] ss:$16 sps:$4 sm:$0xff]   ;;  %v5428_v12 = vld [vmem:[#allocation5 + $0x588] ss:$16 sps:$4 sm:$0xff]  }
 0x102   :  { %3349 = vmatprep.subr.bf16.mxu0 %v5343_v10  ;;  %v5425_v10 = vld [vmem:[#allocation5 + $0x980] ss:$16 sps:$4 sm:$0xff]  }
 0x104   :  { %3596 = vmatpush1.bf16.msra.mxu1 %v5344_v14  ;;  %v5436_v14 = vld [vmem:[#allocation5 + $0x5ac] ss:$16 sps:$4 sm:$0xff]  }
 0x105   :  { %3350 = vmatpush1.bf16.msra.mxu0 %v5341_v13  ;;  %3597 = vmatprep.subr.bf16.mxu1 %v5352_v17  ;;  %v5433_v13 = vld [vmem:[#allocation5 + $0x9a4] ss:$16 sps:$4 sm:$0xff]   ;;  %v5434_v17 = vld [vmem:[#allocation5 + $0x5a8] ss:$16 sps:$4 sm:$0xff]  }
 0x106   :  { %3351 = vmatprep.subr.bf16.mxu0 %v5349_v15  ;;  %v5431_v15 = vld [vmem:[#allocation5 + $0x9a0] ss:$16 sps:$4 sm:$0xff]  }
 0x108   :  { %3598 = vmatpush1.bf16.msra.mxu1 %v5350_v19  ;;  %v5442_v19 = vld [vmem:[#allocation5 + $0x5cc] ss:$16 sps:$4 sm:$0xff]  }
 0x109   :  { %3352 = vmatpush1.bf16.msra.mxu0 %v5347_v18  ;;  %3608 = vmatprep.subr.bf16.mxu1 %v5358_v22  ;;  %v5439_v18 = vld [vmem:[#allocation5 + $0x9c4] ss:$16 sps:$4 sm:$0xff]  }
 0x10a   :  { %3362 = vmatprep.subr.bf16.mxu0 %v5355_v20  ;;  %v5437_v20 = vld [vmem:[#allocation5 + $0x9c0] ss:$16 sps:$4 sm:$0xff]   ;;  %v5445_v22 = vld [vmem:[#allocation5 + $0x9e4] ss:$16 sps:$4 sm:$0xff]  }
 0x10b   :  { %3600 = vmatmul.mubr.bf16.vlgmr.msra.gmra.mrb[4].mxu1 %v6155_v11  ;;  %v5376_v11 = vld [vmem:[#allocation5 + $0x46c] ss:$16 sps:$4 sm:$0xff]  }
 0x10c   :  { %3354 = vmatmul.mubr.bf16.vlgmr.msra.gmra.mrb[0].mxu0 %v6171_v25  ;;  %3609 = vmatpush1.bf16.msra.mxu1 %v5356_v27  ;;  %v5446_v27 = vld [vmem:[#allocation5 + $0x5e8] ss:$16 sps:$4 sm:$0xff]  }
 0x10d   :  { %3363 = vmatpush1.bf16.msra.mxu0 %v5353_v24  ;;  %3610 = vmatprep.subr.bf16.mxu1 %v5364_v29  ;;  %v5448_v24 = vld [vmem:[#allocation5 + $0x5ec] ss:$16 sps:$4 sm:$0xff]   ;;  %v5451_v29 = vld [vmem:[#allocation5 + $0xa04] ss:$16 sps:$4 sm:$0xff]  }
 0x10e   :  { %3364 = vmatprep.subr.bf16.mxu0 %v5361_v28  ;;  %3394 = vmatprep.mubr.bf16.mxu0 %v6173_v8  ;;  %v80_v28 = vld [vmem:[#allocation2 + $0x40] sm:$0xff] }
 0x10f   :  { %3640 = vmatprep.mubr.bf16.mxu1 %v6160_v36  ;;  %v5380_v36 = vld [vmem:[#allocation5 + $0x488] ss:$16 sps:$4 sm:$0xff]  }
 0x110   :  { %3611 = vmatpush1.bf16.msra.mxu1 %v5362_v31  ;;  %v5449_v31 = vld [vmem:[#allocation5 + $0xa00] ss:$16 sps:$4 sm:$0xff]  }
 0x111   :  { %3365 = vmatpush1.bf16.msra.mxu0 %v5359_v30  ;;  %3612 = vmatprep.subr.bf16.mxu1 %v5370_v33  ;;  %v5454_v30 = vld [vmem:[#allocation5 + $0x60c] ss:$16 sps:$4 sm:$0xff]  }
 0x112   :  { %3366 = vmatprep.subr.bf16.mxu0 %v5367_v32  ;;  %v6179_v32 = vpack.c.bf16 %v80_v28, %v80_v28  ;;  %v83_v33 = vld [vmem:[#allocation2 + $0x58] sm:$0xff]  ;;  %v5527_v28 = vld [vmem:[#allocation5 + $0xba0] ss:$16 sps:$4 sm:$0xff]  }
 0x114   :  { %3613 = vmatpush1.bf16.msra.mxu1 %v5368_v35  ;;  %v5457_v35 = vld [vmem:[#allocation5 + $0xa24] ss:$16 sps:$4 sm:$0xff]  }
 0x115   :  { %3367 = vmatpush1.bf16.msra.mxu0 %v5365_v34  ;;  %3614 = vmatprep.subr.bf16.mxu1 %v5376_v11  ;;  %v5452_v34 = vld [vmem:[#allocation5 + $0x608] ss:$16 sps:$4 sm:$0xff]   ;;  %v6181_v11 = vpack.c.bf16 %v83_v33, %v83_v33  ;;  %v5533_v33 = vld [vmem:[#allocation5 + $0xbc0] ss:$16 sps:$4 sm:$0xff]  }
 0x116   :  { %3368 = vmatprep.subr.bf16.mxu0 %v5373_v52  ;;  %v5460_v52 = vld [vmem:[#allocation5 + $0x62c] ss:$16 sps:$4 sm:$0xff]  }
 0x118   :  { %3615 = vmatpush1.bf16.msra.mxu1 %v5374_v38  ;;  %v5458_v38 = vld [vmem:[#allocation5 + $0x628] ss:$16 sps:$4 sm:$0xff]  }
 0x119   :  { %3369 = vmatpush1.bf16.msra.mxu0 %v5371_v37  ;;  %3616 = vmatprep.subr.bf16.mxu1 %v5382_v40  ;;  %v5455_v37 = vld [vmem:[#allocation5 + $0xa20] ss:$16 sps:$4 sm:$0xff]   ;;  %v5466_v40 = vld [vmem:[#allocation5 + $0x64c] ss:$16 sps:$4 sm:$0xff]  }
 0x11a   :  { %3370 = vmatprep.subr.bf16.mxu0 %v5379_v39  ;;  %v5463_v39 = vld [vmem:[#allocation5 + $0xa44] ss:$16 sps:$4 sm:$0xff]  }
 0x11c   :  { %3617 = vmatpush1.bf16.msra.mxu1 %v5380_v36  ;;  %v5464_v36 = vld [vmem:[#allocation5 + $0x648] ss:$16 sps:$4 sm:$0xff]  }
 0x11d   :  { %3371 = vmatpush1.bf16.msra.mxu0 %v5377_v41  ;;  %3618 = vmatprep.subr.bf16.mxu1 %v5388_v43  ;;  %v5461_v41 = vld [vmem:[#allocation5 + $0xa40] ss:$16 sps:$4 sm:$0xff]  }
 0x11e   :  { %3372 = vmatprep.subr.bf16.mxu0 %v5385_v42  ;;  %v5469_v42 = vld [vmem:[#allocation5 + $0xa64] ss:$16 sps:$4 sm:$0xff]   ;;  %v5467_v43 = vld [vmem:[#allocation5 + $0xa60] ss:$16 sps:$4 sm:$0xff]  }
 0x120   :  { %3619 = vmatpush1.bf16.msra.mxu1 %v5386_v45  ;;  %v5475_v45 = vld [vmem:[#allocation5 + $0xa84] ss:$16 sps:$4 sm:$0xff]  }
 0x121   :  { %3373 = vmatpush1.bf16.msra.mxu0 %v5383_v44  ;;  %3620 = vmatprep.subr.bf16.mxu1 %v5394_v47  ;;  %v5470_v44 = vld [vmem:[#allocation5 + $0x668] ss:$16 sps:$4 sm:$0xff]   ;;  %v5473_v47 = vld [vmem:[#allocation5 + $0xa80] ss:$16 sps:$4 sm:$0xff]  }
 0x122   :  { %3374 = vmatprep.subr.bf16.mxu0 %v5391_v46  ;;  %v5478_v46 = vld [vmem:[#allocation5 + $0x68c] ss:$16 sps:$4 sm:$0xff]  }
 0x124   :  { %3621 = vmatpush1.bf16.msra.mxu1 %v5392_v49  ;;  %v5484_v49 = vld [vmem:[#allocation5 + $0x6ac] ss:$16 sps:$4 sm:$0xff]  }
 0x125   :  { %3375 = vmatpush1.bf16.msra.mxu0 %v5389_v48  ;;  %3622 = vmatprep.subr.bf16.mxu1 %v5400_v51  ;;  %v5481_v48 = vld [vmem:[#allocation5 + $0xaa4] ss:$16 sps:$4 sm:$0xff]   ;;  %v5482_v51 = vld [vmem:[#allocation5 + $0x6a8] ss:$16 sps:$4 sm:$0xff]  }
 0x126   :  { %3376 = vmatprep.subr.bf16.mxu0 %v5397_v50  ;;  %v5479_v50 = vld [vmem:[#allocation5 + $0xaa0] ss:$16 sps:$4 sm:$0xff]  }
 0x128   :  { %3623 = vmatpush1.bf16.msra.mxu1 %v5398_v54  ;;  %v5490_v54 = vld [vmem:[#allocation5 + $0x6cc] ss:$16 sps:$4 sm:$0xff]  }
 0x129   :  { %3377 = vmatpush1.bf16.msra.mxu0 %v5395_v53  ;;  %3624 = vmatprep.subr.bf16.mxu1 %v5406_v56  ;;  %v5487_v53 = vld [vmem:[#allocation5 + $0xac4] ss:$16 sps:$4 sm:$0xff]  }
 0x12a   :  { %3378 = vmatprep.subr.bf16.mxu0 %v5403_v55 }
 0x12c   :  { %3625 = vmatpush1.bf16.msra.mxu1 %v5404_v58  ;;  %v5485_v58 = vld [vmem:[#allocation5 + $0xac0] ss:$16 sps:$4 sm:$0xff]  }
 0x12d   :  { %3379 = vmatpush1.bf16.msra.mxu0 %v5401_v57  ;;  %3626 = vmatprep.subr.bf16.mxu1 %v5412_v60 }
 0x12e   :  { %3380 = vmatprep.subr.bf16.mxu0 %v5409_v59  ;;  %v5488_v59 = vld [vmem:[#allocation5 + $0x6c8] ss:$16 sps:$4 sm:$0xff]  }
 0x130   :  { %3627 = vmatpush1.bf16.msra.mxu1 %v5410_v62  ;;  %v5496_v62 = vld [vmem:[#allocation5 + $0x6ec] ss:$16 sps:$4 sm:$0xff]  }
 0x131   :  { %3381 = vmatpush1.bf16.msra.mxu0 %v5407_v61  ;;  %3628 = vmatprep.subr.bf16.mxu1 %v5418_v0  ;;  %v5493_v61 = vld [vmem:[#allocation5 + $0xae4] ss:$16 sps:$4 sm:$0xff]   ;;  %v5494_v0 = vld [vmem:[#allocation5 + $0x6e8] ss:$16 sps:$4 sm:$0xff]  }
 0x132   :  { %3382 = vmatprep.subr.bf16.mxu0 %v5415_v63  ;;  %v5491_v63 = vld [vmem:[#allocation5 + $0xae0] ss:$16 sps:$4 sm:$0xff]  }
 0x134   :  { %3629 = vmatpush1.bf16.msra.mxu1 %v5416_v2  ;;  %v5502_v2 = vld [vmem:[#allocation5 + $0x70c] ss:$16 sps:$4 sm:$0xff]  }
 0x135   :  { %3383 = vmatpush1.bf16.msra.mxu0 %v5413_v1  ;;  %3630 = vmatprep.subr.bf16.mxu1 %v5424_v4  ;;  %v5499_v1 = vld [vmem:[#allocation5 + $0xb04] ss:$16 sps:$4 sm:$0xff]   ;;  %v5500_v4 = vld [vmem:[#allocation5 + $0x708] ss:$16 sps:$4 sm:$0xff]  }
 0x136   :  { %3384 = vmatprep.subr.bf16.mxu0 %v5421_v3  ;;  %v5497_v3 = vld [vmem:[#allocation5 + $0xb00] ss:$16 sps:$4 sm:$0xff]  }
 0x138   :  { %3631 = vmatpush1.bf16.msra.mxu1 %v5422_v6  ;;  %v5508_v6 = vld [vmem:[#allocation5 + $0x72c] ss:$16 sps:$4 sm:$0xff]  }
 0x139   :  { %3385 = vmatpush1.bf16.msra.mxu0 %v5419_v5  ;;  %3632 = vmatprep.subr.bf16.mxu1 %v5430_v9  ;;  %v5505_v5 = vld [vmem:[#allocation5 + $0xb24] ss:$16 sps:$4 sm:$0xff]   ;;  %v5506_v9 = vld [vmem:[#allocation5 + $0x728] ss:$16 sps:$4 sm:$0xff]  }
 0x13a   :  { %3386 = vmatprep.subr.bf16.mxu0 %v5427_v7  ;;  %v5503_v7 = vld [vmem:[#allocation5 + $0xb20] ss:$16 sps:$4 sm:$0xff]  }
 0x13c   :  { %3633 = vmatpush1.bf16.msra.mxu1 %v5428_v12  ;;  %v5514_v12 = vld [vmem:[#allocation5 + $0x74c] ss:$16 sps:$4 sm:$0xff]  }
 0x13d   :  { %3387 = vmatpush1.bf16.msra.mxu0 %v5425_v10  ;;  %3634 = vmatprep.subr.bf16.mxu1 %v5436_v14  ;;  %v5511_v10 = vld [vmem:[#allocation5 + $0xb44] ss:$16 sps:$4 sm:$0xff]   ;;  %v5512_v14 = vld [vmem:[#allocation5 + $0x748] ss:$16 sps:$4 sm:$0xff]  }
 0x13e   :  { %3388 = vmatprep.subr.bf16.mxu0 %v5433_v13  ;;  %v5509_v13 = vld [vmem:[#allocation5 + $0xb40] ss:$16 sps:$4 sm:$0xff]  }
 0x140   :  { %3635 = vmatpush1.bf16.msra.mxu1 %v5434_v17  ;;  %v5520_v17 = vld [vmem:[#allocation5 + $0x76c] ss:$16 sps:$4 sm:$0xff]  }
 0x141   :  { %3389 = vmatpush1.bf16.msra.mxu0 %v5431_v15  ;;  %3636 = vmatprep.subr.bf16.mxu1 %v5442_v19  ;;  %v5517_v15 = vld [vmem:[#allocation5 + $0xb64] ss:$16 sps:$4 sm:$0xff]   ;;  %v5518_v19 = vld [vmem:[#allocation5 + $0x768] ss:$16 sps:$4 sm:$0xff]  }
 0x142   :  { %3390 = vmatprep.subr.bf16.mxu0 %v5439_v18  ;;  %v5515_v18 = vld [vmem:[#allocation5 + $0xb60] ss:$16 sps:$4 sm:$0xff]  }
 0x144   :  { %3637 = vmatpush1.bf16.msra.mxu1 %v5440_v21  ;;  %v5526_v21 = vld [vmem:[#allocation5 + $0x78c] ss:$16 sps:$4 sm:$0xff]  }
 0x145   :  { %3391 = vmatpush1.bf16.msra.mxu0 %v5437_v20  ;;  %3638 = vmatprep.subr.bf16.mxu1 %v5448_v24  ;;  %v5523_v20 = vld [vmem:[#allocation5 + $0xb84] ss:$16 sps:$4 sm:$0xff]   ;;  %v5524_v24 = vld [vmem:[#allocation5 + $0x788] ss:$16 sps:$4 sm:$0xff]  }
 0x146   :  { %3392 = vmatprep.subr.bf16.mxu0 %v5445_v22  ;;  %v5521_v22 = vld [vmem:[#allocation5 + $0xb80] ss:$16 sps:$4 sm:$0xff]  }
 0x148   :  { %3639 = vmatpush1.bf16.msra.mxu1 %v5446_v27  ;;  %v5532_v27 = vld [vmem:[#allocation5 + $0x7ac] ss:$16 sps:$4 sm:$0xff]  }
 0x149   :  { %3393 = vmatpush1.bf16.msra.mxu0 %v5443_v26  ;;  %3649 = vmatprep.subr.bf16.mxu1 %v5454_v30  ;;  %v5529_v26 = vld [vmem:[#allocation5 + $0xba4] ss:$16 sps:$4 sm:$0xff]  }
 0x14a   :  { %3403 = vmatprep.subr.bf16.mxu0 %v5451_v29  ;;  %v5530_v29 = vld [vmem:[#allocation5 + $0x7a8] ss:$16 sps:$4 sm:$0xff]   ;;  %v5535_v30 = vld [vmem:[#allocation5 + $0xbc4] ss:$16 sps:$4 sm:$0xff]  }
 0x14b   :  { %3641 = vmatmul.mubr.bf16.vlgmr.msra.gmra.mrb[4].mxu1 %v6163_v16  ;;  %v5472_v16 = vld [vmem:[#allocation5 + $0x66c] ss:$16 sps:$4 sm:$0xff]  }
 0x14c   :  { %3395 = vmatmul.mubr.bf16.vlgmr.msra.gmra.mrb[0].mxu0 %v6179_v32  ;;  %3650 = vmatpush1.bf16.msra.mxu1 %v5452_v34  ;;  %v5536_v34 = vld [vmem:[#allocation5 + $0x7c8] ss:$16 sps:$4 sm:$0xff]  }
 0x14d   :  { %3404 = vmatpush1.bf16.msra.mxu0 %v5449_v31  ;;  %3651 = vmatprep.subr.bf16.mxu1 %v5460_v52  ;;  %v5538_v31 = vld [vmem:[#allocation5 + $0x7cc] ss:$16 sps:$4 sm:$0xff]  }
 0x14e   :  { %3405 = vmatprep.subr.bf16.mxu0 %v5457_v35  ;;  %3435 = vmatprep.mubr.bf16.mxu0 %v6181_v11  ;;  %v5541_v35 = vld [vmem:[#allocation5 + $0xbe4] ss:$16 sps:$4 sm:$0xff]   ;;  %v5544_v52 = vld [vmem:[#allocation5 + $0x7ec] ss:$16 sps:$4 sm:$0xff]  }
 0x14f   :  { %3681 = vmatprep.mubr.bf16.mxu1 %v6167_v23  ;;  %v5476_v23 = vld [vmem:[#allocation5 + $0x688] ss:$16 sps:$4 sm:$0xff]  }
 0x150   :  { %3652 = vmatpush1.bf16.msra.mxu1 %v5458_v38  ;;  %v5542_v38 = vld [vmem:[#allocation5 + $0x7e8] ss:$16 sps:$4 sm:$0xff]  }
 0x151   :  { %3406 = vmatpush1.bf16.msra.mxu0 %v5455_v37  ;;  %3653 = vmatprep.subr.bf16.mxu1 %v5466_v40  ;;  %v5539_v37 = vld [vmem:[#allocation5 + $0xbe0] ss:$16 sps:$4 sm:$0xff]   ;;  %v5547_v40 = vld [vmem:[#allocation5 + $0xc04] ss:$16 sps:$4 sm:$0xff]  }
 0x152   :  { %3407 = vmatprep.subr.bf16.mxu0 %v5463_v39  ;;  %v82_v39 = vld [vmem:[#allocation2 + $0x50] sm:$0xff] }
 0x154   :  { %3654 = vmatpush1.bf16.msra.mxu1 %v5464_v36  ;;  %v5545_v36 = vld [vmem:[#allocation5 + $0xc00] ss:$16 sps:$4 sm:$0xff]  }
 0x155   :  { %3408 = vmatpush1.bf16.msra.mxu0 %v5461_v41  ;;  %3655 = vmatprep.subr.bf16.mxu1 %v5472_v16  ;;  %v5550_v41 = vld [vmem:[#allocation5 + $0x80c] ss:$16 sps:$4 sm:$0xff]   ;;  %v6191_v16 = vpack.c.bf16 %v82_v39, %v82_v39  ;;  %v5631_v39 = vld [vmem:[#allocation5 + $0xdc4] ss:$16 sps:$4 sm:$0xff]  }
 0x156   :  { %3409 = vmatprep.subr.bf16.mxu0 %v5469_v42  ;;  %v5548_v42 = vld [vmem:[#allocation5 + $0x808] ss:$16 sps:$4 sm:$0xff]  }
 0x158   :  { %3656 = vmatpush1.bf16.msra.mxu1 %v5470_v44  ;;  %v5553_v44 = vld [vmem:[#allocation5 + $0xc24] ss:$16 sps:$4 sm:$0xff]  }
 0x159   :  { %3410 = vmatpush1.bf16.msra.mxu0 %v5467_v43  ;;  %3657 = vmatprep.subr.bf16.mxu1 %v5478_v46  ;;  %v85_v43 = vld [vmem:[#allocation2 + $0x68] sm:$0xff]  ;;  %v5551_v46 = vld [vmem:[#allocation5 + $0xc20] ss:$16 sps:$4 sm:$0xff]  }
 0x15a   :  { %3411 = vmatprep.subr.bf16.mxu0 %v5475_v45  ;;  %v5556_v45 = vld [vmem:[#allocation5 + $0x82c] ss:$16 sps:$4 sm:$0xff]  }
 0x15c   :  { %3658 = vmatpush1.bf16.msra.mxu1 %v5476_v23  ;;  %v6193_v23 = vpack.c.bf16 %v85_v43, %v85_v43  ;;  %v5640_v43 = vld [vmem:[#allocation5 + $0x9ec] ss:$16 sps:$4 sm:$0xff]  }
 0x15d   :  { %3412 = vmatpush1.bf16.msra.mxu0 %v5473_v47  ;;  %3659 = vmatprep.subr.bf16.mxu1 %v5484_v49  ;;  %v5554_v47 = vld [vmem:[#allocation5 + $0x828] ss:$16 sps:$4 sm:$0xff]   ;;  %v5562_v49 = vld [vmem:[#allocation5 + $0x84c] ss:$16 sps:$4 sm:$0xff]  }
 0x15e   :  { %3413 = vmatprep.subr.bf16.mxu0 %v5481_v48  ;;  %v6187_v55 = vpop.f32.mrb[0].mxu1  ;;  %v5559_v48 = vld [vmem:[#allocation5 + $0xc44] ss:$16 sps:$4 sm:$0xff]  }
 0x15f   :  { %v6189_v56 = vpop.f32.mrb[1].mxu1 }
 0x160   :  { %v3236_v57 = vpop.f32.mrb[2].mxu1  ;;  %3660 = vmatpush1.bf16.msra.mxu1 %v5482_v51  ;;  %v5560_v51 = vld [vmem:[#allocation5 + $0x848] ss:$16 sps:$4 sm:$0xff]  }
 0x161   :  { %3414 = vmatpush1.bf16.msra.mxu0 %v5479_v50  ;;  %v3237_v60 = vpop.f32.mrb[3].mxu1  ;;  %3661 = vmatprep.subr.bf16.mxu1 %v5490_v54  ;;  %v5557_v50 = vld [vmem:[#allocation5 + $0xc40] ss:$16 sps:$4 sm:$0xff]   ;;  %v5568_v54 = vld [vmem:[#allocation5 + $0x86c] ss:$16 sps:$4 sm:$0xff]  }
 0x162   :  { %3415 = vmatprep.subr.bf16.mxu0 %v5487_v53  ;;  %v5565_v53 = vld [vmem:[#allocation5 + $0xc64] ss:$16 sps:$4 sm:$0xff]   ;;  %v5563_v57 = vld [vmem:[#allocation5 + $0xc60] ss:$16 sps:$4 sm:$0xff]  }
 0x163   :  { %v5569_v60 = vld [vmem:[#allocation5 + $0xc80] ss:$16 sps:$4 sm:$0xff]  }
 0x164   :  { %3662 = vmatpush1.bf16.msra.mxu1 %v5488_v59  ;;  %v5574_v59 = vld [vmem:[#allocation5 + $0x88c] ss:$16 sps:$4 sm:$0xff]  }
 0x165   :  { %3416 = vmatpush1.bf16.msra.mxu0 %v5485_v58  ;;  %3663 = vmatprep.subr.bf16.mxu1 %v5496_v62  ;;  %v5571_v58 = vld [vmem:[#allocation5 + $0xc84] ss:$16 sps:$4 sm:$0xff]  }
 0x166   :  { %3417 = vmatprep.subr.bf16.mxu0 %v5493_v61  ;;  %v5572_v61 = vld [vmem:[#allocation5 + $0x888] ss:$16 sps:$4 sm:$0xff]   ;;  %v5577_v62 = vld [vmem:[#allocation5 + $0xca4] ss:$16 sps:$4 sm:$0xff]  }
 0x168   :  { %3664 = vmatpush1.bf16.msra.mxu1 %v5494_v0  ;;  %v5578_v0 = vld [vmem:[#allocation5 + $0x8a8] ss:$16 sps:$4 sm:$0xff]  }
 0x169   :  { %3418 = vmatpush1.bf16.msra.mxu0 %v5491_v63  ;;  %3665 = vmatprep.subr.bf16.mxu1 %v5502_v2  ;;  %v5575_v63 = vld [vmem:[#allocation5 + $0xca0] ss:$16 sps:$4 sm:$0xff]   ;;  %v5586_v2 = vld [vmem:[#allocation5 + $0x8cc] ss:$16 sps:$4 sm:$0xff]  }
 0x16a   :  { %3419 = vmatprep.subr.bf16.mxu0 %v5499_v1  ;;  %v5583_v1 = vld [vmem:[#allocation5 + $0xcc4] ss:$16 sps:$4 sm:$0xff]  }
 0x16c   :  { %3666 = vmatpush1.bf16.msra.mxu1 %v5500_v4  ;;  %v5584_v4 = vld [vmem:[#allocation5 + $0x8c8] ss:$16 sps:$4 sm:$0xff]  }
 0x16d   :  { %3420 = vmatpush1.bf16.msra.mxu0 %v5497_v3  ;;  %3667 = vmatprep.subr.bf16.mxu1 %v5508_v6  ;;  %v5581_v3 = vld [vmem:[#allocation5 + $0xcc0] ss:$16 sps:$4 sm:$0xff]   ;;  %v5592_v6 = vld [vmem:[#allocation5 + $0x8ec] ss:$16 sps:$4 sm:$0xff]  }
 0x16e   :  { %3421 = vmatprep.subr.bf16.mxu0 %v5505_v5  ;;  %v5589_v5 = vld [vmem:[#allocation5 + $0xce4] ss:$16 sps:$4 sm:$0xff]  }
 0x170   :  { %3668 = vmatpush1.bf16.msra.mxu1 %v5506_v9  ;;  %v5590_v9 = vld [vmem:[#allocation5 + $0x8e8] ss:$16 sps:$4 sm:$0xff]  }
 0x171   :  { %3422 = vmatpush1.bf16.msra.mxu0 %v5503_v7  ;;  %3669 = vmatprep.subr.bf16.mxu1 %v5514_v12  ;;  %v5587_v7 = vld [vmem:[#allocation5 + $0xce0] ss:$16 sps:$4 sm:$0xff]   ;;  %v5598_v12 = vld [vmem:[#allocation5 + $0x90c] ss:$16 sps:$4 sm:$0xff]  }
 0x172   :  { %3423 = vmatprep.subr.bf16.mxu0 %v5511_v10  ;;  %v5595_v10 = vld [vmem:[#allocation5 + $0xd04] ss:$16 sps:$4 sm:$0xff]  }
 0x174   :  { %3670 = vmatpush1.bf16.msra.mxu1 %v5512_v14  ;;  %v5596_v14 = vld [vmem:[#allocation5 + $0x908] ss:$16 sps:$4 sm:$0xff]  }
 0x175   :  { %3424 = vmatpush1.bf16.msra.mxu0 %v5509_v13  ;;  %3671 = vmatprep.subr.bf16.mxu1 %v5520_v17  ;;  %v5593_v13 = vld [vmem:[#allocation5 + $0xd00] ss:$16 sps:$4 sm:$0xff]   ;;  %v5604_v17 = vld [vmem:[#allocation5 + $0x92c] ss:$16 sps:$4 sm:$0xff]  }
 0x176   :  { %3425 = vmatprep.subr.bf16.mxu0 %v5517_v15  ;;  %v5601_v15 = vld [vmem:[#allocation5 + $0xd24] ss:$16 sps:$4 sm:$0xff]  }
 0x178   :  { %3672 = vmatpush1.bf16.msra.mxu1 %v5518_v19  ;;  %v5602_v19 = vld [vmem:[#allocation5 + $0x928] ss:$16 sps:$4 sm:$0xff]  }
 0x179   :  { %3426 = vmatpush1.bf16.msra.mxu0 %v5515_v18  ;;  %3673 = vmatprep.subr.bf16.mxu1 %v5526_v21  ;;  %v5599_v18 = vld [vmem:[#allocation5 + $0xd20] ss:$16 sps:$4 sm:$0xff]   ;;  %v5610_v21 = vld [vmem:[#allocation5 + $0x94c] ss:$16 sps:$4 sm:$0xff]  }
 0x17a   :  { %3427 = vmatprep.subr.bf16.mxu0 %v5523_v20  ;;  %v5607_v20 = vld [vmem:[#allocation5 + $0xd44] ss:$16 sps:$4 sm:$0xff]  }
 0x17c   :  { %3674 = vmatpush1.bf16.msra.mxu1 %v5524_v24  ;;  %v5608_v24 = vld [vmem:[#allocation5 + $0x948] ss:$16 sps:$4 sm:$0xff]  }
 0x17d   :  { %3428 = vmatpush1.bf16.msra.mxu0 %v5521_v22  ;;  %3675 = vmatprep.subr.bf16.mxu1 %v5532_v27  ;;  %v5605_v22 = vld [vmem:[#allocation5 + $0xd40] ss:$16 sps:$4 sm:$0xff]   ;;  %v5616_v27 = vld [vmem:[#allocation5 + $0x96c] ss:$16 sps:$4 sm:$0xff]  }
 0x17e   :  { %3429 = vmatprep.subr.bf16.mxu0 %v5529_v26  ;;  %v5613_v26 = vld [vmem:[#allocation5 + $0xd64] ss:$16 sps:$4 sm:$0xff]  }
 0x180   :  { %3676 = vmatpush1.bf16.msra.mxu1 %v5530_v29  ;;  %v5614_v29 = vld [vmem:[#allocation5 + $0x968] ss:$16 sps:$4 sm:$0xff]  }
 0x181   :  { %3430 = vmatpush1.bf16.msra.mxu0 %v5527_v28  ;;  %3677 = vmatprep.subr.bf16.mxu1 %v5538_v31  ;;  %v5611_v28 = vld [vmem:[#allocation5 + $0xd60] ss:$16 sps:$4 sm:$0xff]   ;;  %v5622_v31 = vld [vmem:[#allocation5 + $0x98c] ss:$16 sps:$4 sm:$0xff]  }
 0x182   :  { %3431 = vmatprep.subr.bf16.mxu0 %v5535_v30  ;;  %v5619_v30 = vld [vmem:[#allocation5 + $0xd84] ss:$16 sps:$4 sm:$0xff]  }
 0x184   :  { %3678 = vmatpush1.bf16.msra.mxu1 %v5536_v34  ;;  %v5620_v34 = vld [vmem:[#allocation5 + $0x988] ss:$16 sps:$4 sm:$0xff]  }
 0x185   :  { %3432 = vmatpush1.bf16.msra.mxu0 %v5533_v33  ;;  %3679 = vmatprep.subr.bf16.mxu1 %v5544_v52  ;;  %v5617_v33 = vld [vmem:[#allocation5 + $0xd80] ss:$16 sps:$4 sm:$0xff]   ;;  %v5628_v52 = vld [vmem:[#allocation5 + $0x9ac] ss:$16 sps:$4 sm:$0xff]  }
 0x186   :  { %3433 = vmatprep.subr.bf16.mxu0 %v5541_v35  ;;  %v5625_v35 = vld [vmem:[#allocation5 + $0xda4] ss:$16 sps:$4 sm:$0xff]  }
 0x188   :  { %3680 = vmatpush1.bf16.msra.mxu1 %v5542_v38  ;;  %v5626_v38 = vld [vmem:[#allocation5 + $0x9a8] ss:$16 sps:$4 sm:$0xff]  }
 0x189   :  { %3434 = vmatpush1.bf16.msra.mxu0 %v5539_v37  ;;  %3690 = vmatprep.subr.bf16.mxu1 %v5550_v41  ;;  %v5623_v37 = vld [vmem:[#allocation5 + $0xda0] ss:$16 sps:$4 sm:$0xff]  }
 0x18a   :  { %3444 = vmatprep.subr.bf16.mxu0 %v5547_v40  ;;  %v5634_v40 = vld [vmem:[#allocation5 + $0x9cc] ss:$16 sps:$4 sm:$0xff]   ;;  %v5629_v41 = vld [vmem:[#allocation5 + $0xdc0] ss:$16 sps:$4 sm:$0xff]  }
 0x18b   :  { %3682 = vmatmul.mubr.bf16.vlgmr.msra.gmra.mrb[4].mxu1 %v6171_v25  ;;  %v5566_v25 = vld [vmem:[#allocation5 + $0x868] ss:$16 sps:$4 sm:$0xff]  }
 0x18c   :  { %3436 = vmatmul.mubr.bf16.vlgmr.msra.gmra.mrb[0].mxu0 %v6191_v16  ;;  %3691 = vmatpush1.bf16.msra.mxu1 %v5548_v42  ;;  %v5637_v42 = vld [vmem:[#allocation5 + $0xde4] ss:$16 sps:$4 sm:$0xff]  }
 0x18d   :  { %3445 = vmatpush1.bf16.msra.mxu0 %v5545_v36  ;;  %3692 = vmatprep.subr.bf16.mxu1 %v5556_v45  ;;  %v5632_v36 = vld [vmem:[#allocation5 + $0x9c8] ss:$16 sps:$4 sm:$0xff]  }
 0x18e   :  { %3446 = vmatprep.subr.bf16.mxu0 %v5553_v44  ;;  %3476 = vmatprep.mubr.bf16.mxu0 %v6193_v23  ;;  %v5635_v44 = vld [vmem:[#allocation5 + $0xde0] ss:$16 sps:$4 sm:$0xff]   ;;  %v5638_v45 = vld [vmem:[#allocation5 + $0x9e8] ss:$16 sps:$4 sm:$0xff]  }
 0x18f   :  { %3722 = vmatprep.mubr.bf16.mxu1 %v6173_v8  ;;  %v5580_v8 = vld [vmem:[#allocation5 + $0x8ac] ss:$16 sps:$4 sm:$0xff]  }
 0x190   :  { %3693 = vmatpush1.bf16.msra.mxu1 %v5554_v47  ;;  %v5643_v47 = vld [vmem:[#allocation5 + $0xe04] ss:$16 sps:$4 sm:$0xff]  }
 0x191   :  { %3447 = vmatpush1.bf16.msra.mxu0 %v5551_v46  ;;  %3694 = vmatprep.subr.bf16.mxu1 %v5562_v49  ;;  %v84_v46 = vld [vmem:[#allocation2 + $0x60] sm:$0xff] }
 0x192   :  { %3448 = vmatprep.subr.bf16.mxu0 %v5559_v48  ;;  %v5646_v48 = vld [vmem:[#allocation5 + $0xa0c] ss:$16 sps:$4 sm:$0xff]   ;;  %v6199_v49 = vpack.c.bf16 %v84_v46, %v84_v46  ;;  %v5727_v46 = vld [vmem:[#allocation5 + $0xfc4] ss:$16 sps:$4 sm:$0xff]  }
 0x194   :  { %3695 = vmatpush1.bf16.msra.mxu1 %v5560_v51  ;;  %v5641_v51 = vld [vmem:[#allocation5 + $0xe00] ss:$16 sps:$4 sm:$0xff]  }
 0x195   :  { %3449 = vmatpush1.bf16.msra.mxu0 %v5557_v50  ;;  %3696 = vmatprep.subr.bf16.mxu1 %v5568_v54  ;;  %v87_v50 = vld [vmem:[#allocation2 + $0x78] sm:$0xff]  ;;  %v5649_v54 = vld [vmem:[#allocation5 + $0xe24] ss:$16 sps:$4 sm:$0xff]  }
 0x196   :  { %3450 = vmatprep.subr.bf16.mxu0 %v5565_v53  ;;  %v5644_v53 = vld [vmem:[#allocation5 + $0xa08] ss:$16 sps:$4 sm:$0xff]  }
 0x198   :  { %3697 = vmatpush1.bf16.msra.mxu1 %v5566_v25  ;;  %v6201_v25 = vpack.c.bf16 %v87_v50, %v87_v50  ;;  %v5728_v50 = vld [vmem:[#allocation5 + $0xbc8] ss:$16 sps:$4 sm:$0xff]  }
 0x199   :  { %3451 = vmatpush1.bf16.msra.mxu0 %v5563_v57  ;;  %3698 = vmatprep.subr.bf16.mxu1 %v5574_v59  ;;  %v5652_v57 = vld [vmem:[#allocation5 + $0xa2c] ss:$16 sps:$4 sm:$0xff]   ;;  %v5650_v59 = vld [vmem:[#allocation5 + $0xa28] ss:$16 sps:$4 sm:$0xff]  }
 0x19a   :  { %3452 = vmatprep.subr.bf16.mxu0 %v5571_v58  ;;  %v5647_v58 = vld [vmem:[#allocation5 + $0xe20] ss:$16 sps:$4 sm:$0xff]  }
 0x19c   :  { %3699 = vmatpush1.bf16.msra.mxu1 %v5572_v61  ;;  %v5658_v61 = vld [vmem:[#allocation5 + $0xa4c] ss:$16 sps:$4 sm:$0xff]  }
 0x19d   :  { %3453 = vmatpush1.bf16.msra.mxu0 %v5569_v60  ;;  %3700 = vmatprep.subr.bf16.mxu1 %v5580_v8  ;;  %v5655_v60 = vld [vmem:[#allocation5 + $0xe44] ss:$16 sps:$4 sm:$0xff]   ;;  %v5656_v8 = vld [vmem:[#allocation5 + $0xa48] ss:$16 sps:$4 sm:$0xff]  }
 0x19e   :  { %3454 = vmatprep.subr.bf16.mxu0 %v5577_v62  ;;  %v5653_v62 = vld [vmem:[#allocation5 + $0xe40] ss:$16 sps:$4 sm:$0xff]  }
 0x1a0   :  { %3701 = vmatpush1.bf16.msra.mxu1 %v5578_v0  ;;  %v5659_v0 = vld [vmem:[#allocation5 + $0xe60] ss:$16 sps:$4 sm:$0xff]  }
 0x1a1   :  { %3455 = vmatpush1.bf16.msra.mxu0 %v5575_v63  ;;  %3702 = vmatprep.subr.bf16.mxu1 %v5586_v2  ;;  %v5661_v63 = vld [vmem:[#allocation5 + $0xe64] ss:$16 sps:$4 sm:$0xff]  }
 0x1a2   :  { %3456 = vmatprep.subr.bf16.mxu0 %v5583_v1  ;;  %v5662_v1 = vld [vmem:[#allocation5 + $0xa68] ss:$16 sps:$4 sm:$0xff]   ;;  %v5667_v2 = vld [vmem:[#allocation5 + $0xe84] ss:$16 sps:$4 sm:$0xff]  }
 0x1a4   :  { %3703 = vmatpush1.bf16.msra.mxu1 %v5584_v4  ;;  %v5665_v4 = vld [vmem:[#allocation5 + $0xe80] ss:$16 sps:$4 sm:$0xff]  }
 0x1a5   :  { %3457 = vmatpush1.bf16.msra.mxu0 %v5581_v3  ;;  %3704 = vmatprep.subr.bf16.mxu1 %v5592_v6  ;;  %v5670_v3 = vld [vmem:[#allocation5 + $0xa8c] ss:$16 sps:$4 sm:$0xff]  }
 0x1a6   :  { %3458 = vmatprep.subr.bf16.mxu0 %v5589_v5  ;;  %v5673_v5 = vld [vmem:[#allocation5 + $0xea4] ss:$16 sps:$4 sm:$0xff]   ;;  %v5676_v6 = vld [vmem:[#allocation5 + $0xaac] ss:$16 sps:$4 sm:$0xff]  }
 0x1a8   :  { %3705 = vmatpush1.bf16.msra.mxu1 %v5590_v9  ;;  %v5674_v9 = vld [vmem:[#allocation5 + $0xaa8] ss:$16 sps:$4 sm:$0xff]  }
 0x1a9   :  { %3459 = vmatpush1.bf16.msra.mxu0 %v5587_v7  ;;  %3706 = vmatprep.subr.bf16.mxu1 %v5598_v12  ;;  %v5671_v7 = vld [vmem:[#allocation5 + $0xea0] ss:$16 sps:$4 sm:$0xff]   ;;  %v5682_v12 = vld [vmem:[#allocation5 + $0xacc] ss:$16 sps:$4 sm:$0xff]  }
 0x1aa   :  { %3460 = vmatprep.subr.bf16.mxu0 %v5595_v10  ;;  %v5679_v10 = vld [vmem:[#allocation5 + $0xec4] ss:$16 sps:$4 sm:$0xff]  }
 0x1ac   :  { %3707 = vmatpush1.bf16.msra.mxu1 %v5596_v14  ;;  %v5680_v14 = vld [vmem:[#allocation5 + $0xac8] ss:$16 sps:$4 sm:$0xff]  }
 0x1ad   :  { %3461 = vmatpush1.bf16.msra.mxu0 %v5593_v13  ;;  %3708 = vmatprep.subr.bf16.mxu1 %v5604_v17  ;;  %v5677_v13 = vld [vmem:[#allocation5 + $0xec0] ss:$16 sps:$4 sm:$0xff]   ;;  %v5688_v17 = vld [vmem:[#allocation5 + $0xaec] ss:$16 sps:$4 sm:$0xff]  }
 0x1ae   :  { %3462 = vmatprep.subr.bf16.mxu0 %v5601_v15  ;;  %v5685_v15 = vld [vmem:[#allocation5 + $0xee4] ss:$16 sps:$4 sm:$0xff]  }
 0x1b0   :  { %3709 = vmatpush1.bf16.msra.mxu1 %v5602_v19  ;;  %v5686_v19 = vld [vmem:[#allocation5 + $0xae8] ss:$16 sps:$4 sm:$0xff]  }
 0x1b1   :  { %3463 = vmatpush1.bf16.msra.mxu0 %v5599_v18  ;;  %3710 = vmatprep.subr.bf16.mxu1 %v5610_v21  ;;  %v5683_v18 = vld [vmem:[#allocation5 + $0xee0] ss:$16 sps:$4 sm:$0xff]   ;;  %v5694_v21 = vld [vmem:[#allocation5 + $0xb0c] ss:$16 sps:$4 sm:$0xff]  }
 0x1b2   :  { %3464 = vmatprep.subr.bf16.mxu0 %v5607_v20  ;;  %v5691_v20 = vld [vmem:[#allocation5 + $0xf04] ss:$16 sps:$4 sm:$0xff]  }
 0x1b4   :  { %3711 = vmatpush1.bf16.msra.mxu1 %v5608_v24  ;;  %v5692_v24 = vld [vmem:[#allocation5 + $0xb08] ss:$16 sps:$4 sm:$0xff]  }
 0x1b5   :  { %3465 = vmatpush1.bf16.msra.mxu0 %v5605_v22  ;;  %3712 = vmatprep.subr.bf16.mxu1 %v5616_v27  ;;  %v5689_v22 = vld [vmem:[#allocation5 + $0xf00] ss:$16 sps:$4 sm:$0xff]   ;;  %v5700_v27 = vld [vmem:[#allocation5 + $0xb2c] ss:$16 sps:$4 sm:$0xff]  }
 0x1b6   :  { %3466 = vmatprep.subr.bf16.mxu0 %v5613_v26  ;;  %v5697_v26 = vld [vmem:[#allocation5 + $0xf24] ss:$16 sps:$4 sm:$0xff]  }
 0x1b8   :  { %3713 = vmatpush1.bf16.msra.mxu1 %v5614_v29  ;;  %v5698_v29 = vld [vmem:[#allocation5 + $0xb28] ss:$16 sps:$4 sm:$0xff]  }
 0x1b9   :  { %3467 = vmatpush1.bf16.msra.mxu0 %v5611_v28  ;;  %3714 = vmatprep.subr.bf16.mxu1 %v5622_v31  ;;  %v5695_v28 = vld [vmem:[#allocation5 + $0xf20] ss:$16 sps:$4 sm:$0xff]   ;;  %v5706_v31 = vld [vmem:[#allocation5 + $0xb4c] ss:$16 sps:$4 sm:$0xff]  }
 0x1ba   :  { %3468 = vmatprep.subr.bf16.mxu0 %v5619_v30  ;;  %v5703_v30 = vld [vmem:[#allocation5 + $0xf44] ss:$16 sps:$4 sm:$0xff]  }
 0x1bc   :  { %3715 = vmatpush1.bf16.msra.mxu1 %v5620_v34  ;;  %v5704_v34 = vld [vmem:[#allocation5 + $0xb48] ss:$16 sps:$4 sm:$0xff]  }
 0x1bd   :  { %3469 = vmatpush1.bf16.msra.mxu0 %v5617_v33  ;;  %3716 = vmatprep.subr.bf16.mxu1 %v5628_v52  ;;  %v5701_v33 = vld [vmem:[#allocation5 + $0xf40] ss:$16 sps:$4 sm:$0xff]   ;;  %v5712_v52 = vld [vmem:[#allocation5 + $0xb6c] ss:$16 sps:$4 sm:$0xff]  }
 0x1be   :  { %3470 = vmatprep.subr.bf16.mxu0 %v5625_v35  ;;  %v5709_v35 = vld [vmem:[#allocation5 + $0xf64] ss:$16 sps:$4 sm:$0xff]  }
 0x1c0   :  { %3717 = vmatpush1.bf16.msra.mxu1 %v5626_v38  ;;  %v5710_v38 = vld [vmem:[#allocation5 + $0xb68] ss:$16 sps:$4 sm:$0xff]  }
 0x1c1   :  { %3471 = vmatpush1.bf16.msra.mxu0 %v5623_v37  ;;  %3718 = vmatprep.subr.bf16.mxu1 %v5634_v40  ;;  %v5707_v37 = vld [vmem:[#allocation5 + $0xf60] ss:$16 sps:$4 sm:$0xff]   ;;  %v5718_v40 = vld [vmem:[#allocation5 + $0xb8c] ss:$16 sps:$4 sm:$0xff]  }
 0x1c2   :  { %3472 = vmatprep.subr.bf16.mxu0 %v5631_v39  ;;  %v5715_v39 = vld [vmem:[#allocation5 + $0xf84] ss:$16 sps:$4 sm:$0xff]  }
 0x1c4   :  { %3719 = vmatpush1.bf16.msra.mxu1 %v5632_v36  ;;  %v5716_v36 = vld [vmem:[#allocation5 + $0xb88] ss:$16 sps:$4 sm:$0xff]  }
 0x1c5   :  { %3473 = vmatpush1.bf16.msra.mxu0 %v5629_v41  ;;  %3720 = vmatprep.subr.bf16.mxu1 %v5640_v43  ;;  %v5713_v41 = vld [vmem:[#allocation5 + $0xf80] ss:$16 sps:$4 sm:$0xff]   ;;  %v5724_v43 = vld [vmem:[#allocation5 + $0xbac] ss:$16 sps:$4 sm:$0xff]  }
 0x1c6   :  { %3474 = vmatprep.subr.bf16.mxu0 %v5637_v42  ;;  %v5721_v42 = vld [vmem:[#allocation5 + $0xfa4] ss:$16 sps:$4 sm:$0xff]  }
 0x1c8   :  { %3721 = vmatpush1.bf16.msra.mxu1 %v5638_v45  ;;  %v5722_v45 = vld [vmem:[#allocation5 + $0xba8] ss:$16 sps:$4 sm:$0xff]  }
 0x1c9   :  { %3475 = vmatpush1.bf16.msra.mxu0 %v5635_v44  ;;  %3731 = vmatprep.subr.bf16.mxu1 %v5646_v48  ;;  %v5719_v44 = vld [vmem:[#allocation5 + $0xfa0] ss:$16 sps:$4 sm:$0xff]  }
 0x1ca   :  { %3485 = vmatprep.subr.bf16.mxu0 %v5643_v47  ;;  %v5730_v47 = vld [vmem:[#allocation5 + $0xbcc] ss:$16 sps:$4 sm:$0xff]   ;;  %v5725_v48 = vld [vmem:[#allocation5 + $0xfc0] ss:$16 sps:$4 sm:$0xff]  }
 0x1cb   :  { %3723 = vmatmul.mubr.bf16.vlgmr.msra.gmra.mrb[4].mxu1 %v6179_v32  ;;  %v5664_v32 = vld [vmem:[#allocation5 + $0xa6c] ss:$16 sps:$4 sm:$0xff]  }
 0x1cc   :  { %3477 = vmatmul.mubr.bf16.vlgmr.msra.gmra.mrb[0].mxu0 %v6199_v49  ;;  %3732 = vmatpush1.bf16.msra.mxu1 %v5644_v53  ;;  %v5736_v53 = vld [vmem:[#allocation5 + $0xbec] ss:$16 sps:$4 sm:$0xff]  }
 0x1cd   :  { %3486 = vmatpush1.bf16.msra.mxu0 %v5641_v51  ;;  %3733 = vmatprep.subr.bf16.mxu1 %v5652_v57  ;;  %v5733_v51 = vld [vmem:[#allocation5 + $0xfe4] ss:$16 sps:$4 sm:$0xff]   ;;  %v5734_v57 = vld [vmem:[#allocation5 + $0xbe8] ss:$16 sps:$4 sm:$0xff]  }
 0x1ce   :  { %3487 = vmatprep.subr.bf16.mxu0 %v5649_v54  ;;  %3517 = vmatprep.mubr.bf16.mxu0 %v6201_v25  ;;  %v5731_v54 = vld [vmem:[#allocation5 + $0xfe0] ss:$16 sps:$4 sm:$0xff]  }
 0x1cf   :  { %3763 = vmatprep.mubr.bf16.mxu1 %v6181_v11  ;;  %v5668_v11 = vld [vmem:[#allocation5 + $0xa88] ss:$16 sps:$4 sm:$0xff]  }
 0x1d0   :  { %3734 = vmatpush1.bf16.msra.mxu1 %v5650_v59  ;;  %v5739_v59 = vld [vmem:[#allocation5 + $0xc0c] ss:$16 sps:$4 sm:$0xff]  }
 0x1d1   :  { %3488 = vmatpush1.bf16.msra.mxu0 %v5647_v58  ;;  %3735 = vmatprep.subr.bf16.mxu1 %v5658_v61  ;;  %v86_v58 = vld [vmem:[#allocation2 + $0x70] sm:$0xff]  ;;  %v5737_v61 = vld [vmem:[#allocation5 + $0xc08] ss:$16 sps:$4 sm:$0xff]  }
 0x1d2   :  { %3489 = vmatprep.subr.bf16.mxu0 %v5655_v60  ;;  %v6207_v60 = vpack.c.bf16 %v86_v58, %v86_v58  ;;  %v5829_v58 = vld [vmem:[#allocation5 + $0xfcc] ss:$16 sps:$4 sm:$0xff]  }
 0x1d4   :  { %3736 = vmatpush1.bf16.msra.mxu1 %v5656_v8  ;;  %v5740_v8 = vld [vmem:[#allocation5 + $0xc28] ss:$16 sps:$4 sm:$0xff]  }
 0x1d5   :  { %3490 = vmatpush1.bf16.msra.mxu0 %v5653_v62  ;;  %3737 = vmatprep.subr.bf16.mxu1 %v5664_v32  ;;  %v5742_v62 = vld [vmem:[#allocation5 + $0xc2c] ss:$16 sps:$4 sm:$0xff]   ;;  %v5743_v32 = vld [vmem:[#allocation5 + $0xc48] ss:$16 sps:$4 sm:$0xff]  }
 0x1d6   :  { %3491 = vmatprep.subr.bf16.mxu0 %v5661_v63  ;;  %v5745_v63 = vld [vmem:[#allocation5 + $0xc4c] ss:$16 sps:$4 sm:$0xff]  }
 0x1d8   :  { %3738 = vmatpush1.bf16.msra.mxu1 %v5662_v1  ;;  %v5746_v1 = vld [vmem:[#allocation5 + $0xc68] ss:$16 sps:$4 sm:$0xff]  }
 0x1d9   :  { %3492 = vmatpush1.bf16.msra.mxu0 %v5659_v0  ;;  %3739 = vmatprep.subr.bf16.mxu1 %v5670_v3  ;;  %v5748_v0 = vld [vmem:[#allocation5 + $0xc6c] ss:$16 sps:$4 sm:$0xff]   ;;  %v5749_v3 = vld [vmem:[#allocation5 + $0xc88] ss:$16 sps:$4 sm:$0xff]  }
 0x1da   :  { %3493 = vmatprep.subr.bf16.mxu0 %v5667_v2  ;;  %v5751_v2 = vld [vmem:[#allocation5 + $0xc8c] ss:$16 sps:$4 sm:$0xff]  }
 0x1dc   :  { %3740 = vmatpush1.bf16.msra.mxu1 %v5668_v11  ;;  %v5757_v11 = vld [vmem:[#allocation5 + $0xccc] ss:$16 sps:$4 sm:$0xff]  }
 0x1dd   :  { %3494 = vmatpush1.bf16.msra.mxu0 %v5665_v4  ;;  %3741 = vmatprep.subr.bf16.mxu1 %v5676_v6  ;;  %v5754_v4 = vld [vmem:[#allocation5 + $0xcac] ss:$16 sps:$4 sm:$0xff]   ;;  %v5758_v6 = vld [vmem:[#allocation5 + $0xce8] ss:$16 sps:$4 sm:$0xff]  }
 0x1de   :  { %3495 = vmatprep.subr.bf16.mxu0 %v5673_v5  ;;  %v5760_v5 = vld [vmem:[#allocation5 + $0xcec] ss:$16 sps:$4 sm:$0xff]  }
 0x1e0   :  { %3742 = vmatpush1.bf16.msra.mxu1 %v5674_v9  ;;  %v5761_v9 = vld [vmem:[#allocation5 + $0xd08] ss:$16 sps:$4 sm:$0xff]  }
 0x1e1   :  { %3496 = vmatpush1.bf16.msra.mxu0 %v5671_v7  ;;  %3743 = vmatprep.subr.bf16.mxu1 %v5682_v12  ;;  %v5763_v7 = vld [vmem:[#allocation5 + $0xd0c] ss:$16 sps:$4 sm:$0xff]   ;;  %v5764_v12 = vld [vmem:[#allocation5 + $0xd28] ss:$16 sps:$4 sm:$0xff]  }
 0x1e2   :  { %3497 = vmatprep.subr.bf16.mxu0 %v5679_v10  ;;  %v5766_v10 = vld [vmem:[#allocation5 + $0xd2c] ss:$16 sps:$4 sm:$0xff]  }
 0x1e4   :  { %3744 = vmatpush1.bf16.msra.mxu1 %v5680_v14  ;;  %v5767_v14 = vld [vmem:[#allocation5 + $0xd48] ss:$16 sps:$4 sm:$0xff]  }
 0x1e5   :  { %3498 = vmatpush1.bf16.msra.mxu0 %v5677_v13  ;;  %3745 = vmatprep.subr.bf16.mxu1 %v5688_v17  ;;  %v5769_v13 = vld [vmem:[#allocation5 + $0xd4c] ss:$16 sps:$4 sm:$0xff]   ;;  %v5770_v17 = vld [vmem:[#allocation5 + $0xd68] ss:$16 sps:$4 sm:$0xff]  }
 0x1e6   :  { %3499 = vmatprep.subr.bf16.mxu0 %v5685_v15  ;;  %v5772_v15 = vld [vmem:[#allocation5 + $0xd6c] ss:$16 sps:$4 sm:$0xff]  }
 0x1e8   :  { %3746 = vmatpush1.bf16.msra.mxu1 %v5686_v19  ;;  %v5773_v19 = vld [vmem:[#allocation5 + $0xd88] ss:$16 sps:$4 sm:$0xff]  }
 0x1e9   :  { %3500 = vmatpush1.bf16.msra.mxu0 %v5683_v18  ;;  %3747 = vmatprep.subr.bf16.mxu1 %v5694_v21  ;;  %v5775_v18 = vld [vmem:[#allocation5 + $0xd8c] ss:$16 sps:$4 sm:$0xff]   ;;  %v5776_v21 = vld [vmem:[#allocation5 + $0xda8] ss:$16 sps:$4 sm:$0xff]  }
 0x1ea   :  { %3501 = vmatprep.subr.bf16.mxu0 %v5691_v20  ;;  %v5778_v20 = vld [vmem:[#allocation5 + $0xdac] ss:$16 sps:$4 sm:$0xff]  }
 0x1ec   :  { %3748 = vmatpush1.bf16.msra.mxu1 %v5692_v24  ;;  %v5779_v24 = vld [vmem:[#allocation5 + $0xdc8] ss:$16 sps:$4 sm:$0xff]  }
 0x1ed   :  { %3502 = vmatpush1.bf16.msra.mxu0 %v5689_v22  ;;  %3749 = vmatprep.subr.bf16.mxu1 %v5700_v27  ;;  %v5781_v22 = vld [vmem:[#allocation5 + $0xdcc] ss:$16 sps:$4 sm:$0xff]   ;;  %v5782_v27 = vld [vmem:[#allocation5 + $0xde8] ss:$16 sps:$4 sm:$0xff]  }
 0x1ee   :  { %3503 = vmatprep.subr.bf16.mxu0 %v5697_v26  ;;  %v5784_v26 = vld [vmem:[#allocation5 + $0xdec] ss:$16 sps:$4 sm:$0xff]  }
 0x1f0   :  { %3750 = vmatpush1.bf16.msra.mxu1 %v5698_v29  ;;  %v5785_v29 = vld [vmem:[#allocation5 + $0xe08] ss:$16 sps:$4 sm:$0xff]  }
 0x1f1   :  { %3504 = vmatpush1.bf16.msra.mxu0 %v5695_v28  ;;  %3751 = vmatprep.subr.bf16.mxu1 %v5706_v31  ;;  %v5787_v28 = vld [vmem:[#allocation5 + $0xe0c] ss:$16 sps:$4 sm:$0xff]   ;;  %v5788_v31 = vld [vmem:[#allocation5 + $0xe28] ss:$16 sps:$4 sm:$0xff]  }
 0x1f2   :  { %3505 = vmatprep.subr.bf16.mxu0 %v5703_v30  ;;  %v5790_v30 = vld [vmem:[#allocation5 + $0xe2c] ss:$16 sps:$4 sm:$0xff]  }
 0x1f4   :  { %3752 = vmatpush1.bf16.msra.mxu1 %v5704_v34  ;;  %v5791_v34 = vld [vmem:[#allocation5 + $0xe48] ss:$16 sps:$4 sm:$0xff]  }
 0x1f5   :  { %3506 = vmatpush1.bf16.msra.mxu0 %v5701_v33  ;;  %3753 = vmatprep.subr.bf16.mxu1 %v5712_v52  ;;  %v5793_v33 = vld [vmem:[#allocation5 + $0xe4c] ss:$16 sps:$4 sm:$0xff]   ;;  %v5794_v52 = vld [vmem:[#allocation5 + $0xe68] ss:$16 sps:$4 sm:$0xff]  }
 0x1f6   :  { %3507 = vmatprep.subr.bf16.mxu0 %v5709_v35  ;;  %v5796_v35 = vld [vmem:[#allocation5 + $0xe6c] ss:$16 sps:$4 sm:$0xff]  }
 0x1f8   :  { %3754 = vmatpush1.bf16.msra.mxu1 %v5710_v38  ;;  %v5797_v38 = vld [vmem:[#allocation5 + $0xe88] ss:$16 sps:$4 sm:$0xff]  }
 0x1f9   :  { %3508 = vmatpush1.bf16.msra.mxu0 %v5707_v37  ;;  %3755 = vmatprep.subr.bf16.mxu1 %v5718_v40  ;;  %v5799_v37 = vld [vmem:[#allocation5 + $0xe8c] ss:$16 sps:$4 sm:$0xff]  }
 0x1fa   :  { %3509 = vmatprep.subr.bf16.mxu0 %v5715_v39  ;;  %v5802_v39 = vld [vmem:[#allocation5 + $0xeac] ss:$16 sps:$4 sm:$0xff]  }
 0x1fb   :  { %v5805_v40 = vld [vmem:[#allocation5 + $0xecc] ss:$16 sps:$4 sm:$0xff]  }
 0x1fc   :  { %3756 = vmatpush1.bf16.msra.mxu1 %v5716_v36  ;;  %v5806_v36 = vld [vmem:[#allocation5 + $0xee8] ss:$16 sps:$4 sm:$0xff]  }
 0x1fd   :  { %3510 = vmatpush1.bf16.msra.mxu0 %v5713_v41  ;;  %3757 = vmatprep.subr.bf16.mxu1 %v5724_v43  ;;  %v5808_v41 = vld [vmem:[#allocation5 + $0xeec] ss:$16 sps:$4 sm:$0xff]   ;;  %v5809_v43 = vld [vmem:[#allocation5 + $0xf08] ss:$16 sps:$4 sm:$0xff]  }
 0x1fe   :  { %3511 = vmatprep.subr.bf16.mxu0 %v5721_v42  ;;  %v5811_v42 = vld [vmem:[#allocation5 + $0xf0c] ss:$16 sps:$4 sm:$0xff]  }
 0x200   :  { %3758 = vmatpush1.bf16.msra.mxu1 %v5722_v45  ;;  %v5812_v45 = vld [vmem:[#allocation5 + $0xf28] ss:$16 sps:$4 sm:$0xff]  }
 0x201   :  { %3512 = vmatpush1.bf16.msra.mxu0 %v5719_v44  ;;  %3759 = vmatprep.subr.bf16.mxu1 %v5730_v47  ;;  %v5814_v44 = vld [vmem:[#allocation5 + $0xf2c] ss:$16 sps:$4 sm:$0xff]   ;;  %v5815_v47 = vld [vmem:[#allocation5 + $0xf48] ss:$16 sps:$4 sm:$0xff]  }
 0x202   :  { %3513 = vmatprep.subr.bf16.mxu0 %v5727_v46  ;;  %v5817_v46 = vld [vmem:[#allocation5 + $0xf4c] ss:$16 sps:$4 sm:$0xff]  }
 0x204   :  { %3760 = vmatpush1.bf16.msra.mxu1 %v5728_v50  ;;  %v5818_v50 = vld [vmem:[#allocation5 + $0xf68] ss:$16 sps:$4 sm:$0xff]  }
 0x205   :  { %3514 = vmatpush1.bf16.msra.mxu0 %v5725_v48  ;;  %3761 = vmatprep.subr.bf16.mxu1 %v5736_v53  ;;  %v5820_v48 = vld [vmem:[#allocation5 + $0xf6c] ss:$16 sps:$4 sm:$0xff]   ;;  %v5821_v53 = vld [vmem:[#allocation5 + $0xf88] ss:$16 sps:$4 sm:$0xff]  }
 0x206   :  { %3515 = vmatprep.subr.bf16.mxu0 %v5733_v51  ;;  %v5823_v51 = vld [vmem:[#allocation5 + $0xf8c] ss:$16 sps:$4 sm:$0xff]  }
 0x208   :  { %3762 = vmatpush1.bf16.msra.mxu1 %v5734_v57  ;;  %v5824_v57 = vld [vmem:[#allocation5 + $0xfa8] ss:$16 sps:$4 sm:$0xff]  }
 0x209   :  { %3516 = vmatpush1.bf16.msra.mxu0 %v5731_v54  ;;  %3772 = vmatprep.subr.bf16.mxu1 %v5739_v59  ;;  %v5826_v54 = vld [vmem:[#allocation5 + $0xfac] ss:$16 sps:$4 sm:$0xff]   ;;  %v5827_v59 = vld [vmem:[#allocation5 + $0xfc8] ss:$16 sps:$4 sm:$0xff]  }
 0x20b   :  { %3764 = vmatmul.mubr.bf16.vlgmr.msra.gmra.mrb[4].mxu1 %v6191_v16  ;;  %v5752_v16 = vld [vmem:[#allocation5 + $0xca8] ss:$16 sps:$4 sm:$0xff]  }
 0x20c   :  { %3518 = vmatmul.mubr.bf16.vlgmr.msra.gmra.mrb[0].mxu0 %v6207_v60  ;;  %3773 = vmatpush1.bf16.msra.mxu1 %v5737_v61  ;;  %v5832_v61 = vld [vmem:[#allocation5 + $0xfec] ss:$16 sps:$4 sm:$0xff]  }
 0x20d   :  { %3804 = vmatprep.mubr.bf16.mxu1 %v6193_v23  ;;  %3774 = vmatprep.subr.bf16.mxu1 %v5742_v62  ;;  %v5755_v23 = vld [vmem:[#allocation5 + $0xcc8] ss:$16 sps:$4 sm:$0xff]  }
 0x20e   :  { %v5830_v62 = vld [vmem:[#allocation5 + $0xfe8] ss:$16 sps:$4 sm:$0xff]  }
 0x210   :  { %3775 = vmatpush1.bf16.msra.mxu1 %v5740_v8  ;;  %v618_v8 = vlaneseq }
 0x211   :  { %3776 = vmatprep.subr.bf16.mxu1 %v5745_v63 }
 0x212   :  { %v6216_v63 = vshrl.u32 %v618_v8, 7 }
 0x214   :  { %3777 = vmatpush1.bf16.msra.mxu1 %v5743_v32  ;;  %v620_v32 = vsub.s32 0, %v6216_v63 }
 0x215   :  { %3778 = vmatprep.subr.bf16.mxu1 %v5748_v0  ;;  %v6219_v0 = vld [vmem:[#allocation7] sm:$0xf] }
 0x218   :  { %3779 = vmatpush1.bf16.msra.mxu1 %v5746_v1  ;;  %v624_v1 = vsub.s32 1, %v6216_v63 }
 0x219   :  { %3780 = vmatprep.subr.bf16.mxu1 %v5751_v2  ;;  %v621_v2 = vrot.slane %v6219_v0, %v620_v32  ;;  %v4341_v32 = vld [vmem:[%s6268_s1] sm:$0xff]  ;;  %s6068_s1 = smov [#allocation10]  }
 0x21a   :  { %s4405_s2 = sshll.u32 %s6068_s1, 4  ;;  %s4406_s2 = int_to_ptr.vmem [resolvable:$true] %s4405_s2 }
 0x21b   :  { %s6029_s18 = scalar_lea.vmem %s4406_s2, 256  ;;  %p6034_p5 = scmp.lt.s32.totalorder %s4406_s2, %s4406_s2 }
 0x21c   :  { %3781 = vmatpush1.bf16.msra.mxu1 %v5749_v3  ;;  %v625_v3 = vrot.slane %v6219_v0, %v624_v1  ;;  %p6030_p4 = scmp.ne.s32.totalorder %s4406_s2, %s6029_s18  ;;  %p6035_p6 = scmp.lt.s32.totalorder %s6029_s18, %s6029_s18 }
 0x21d   :  { %3782 = vmatprep.subr.bf16.mxu1 %v5754_v4  ;;  %v3233_v4 = vadd.f32 %v6187_v55, %v621_v2  ;;  %v5839_v55 = vld [vmem:[#allocation8 + $0x20] ss:$8 sps:$4 sm:$0xff]  }
 0x21e   :  { %p6036_p7 = por %p6035_p6, %p6034_p5 }
 0x220   :  { %3783 = vmatpush1.bf16.msra.mxu1 %v5752_v16  ;;  %v3235_v16 = vadd.f32 %v6189_v56, %v625_v3  ;;  %v5844_v56 = vld [vmem:[#allocation8 + $0x34] ss:$8 sps:$4 sm:$0xff]   ;;  %p6037_p8 = pnand %p6036_p7, %p6030_p4 }
 0x221   :  { %3784 = vmatprep.subr.bf16.mxu1 %v5757_v11 }
 0x224   :  { %3785 = vmatpush1.bf16.msra.mxu1 %v5755_v23 }
 0x225   :  { %3786 = vmatprep.subr.bf16.mxu1 %v5760_v5 }
 0x228   :  { %3787 = vmatpush1.bf16.msra.mxu1 %v5758_v6 }
 0x229   :  { %3788 = vmatprep.subr.bf16.mxu1 %v5763_v7 }
 0x22c   :  { %3789 = vmatpush1.bf16.msra.mxu1 %v5761_v9  ;;  %v5833_v9 = vld [vmem:[#allocation8] ss:$8 sps:$4 sm:$0xff]  }
 0x22d   :  { %3790 = vmatprep.subr.bf16.mxu1 %v5766_v10  ;;  %v5835_v10 = vld [vmem:[#allocation8 + $0x4] ss:$8 sps:$4 sm:$0xff]  }
 0x22e   :  { %4256 = vmatprep.subr.bf16.mxu0 %v5835_v10  ;;  %v5884_v10 = vld [vmem:[#allocation8 + $0x110] ss:$8 sps:$4 sm:$0xff]  }
 0x22f   :  { %4257 = vmatpush1.bf16.msra.mxu0 %v5833_v9 }
 0x230   :  { %3791 = vmatpush1.bf16.msra.mxu1 %v5764_v12  ;;  %v5838_v12 = vld [vmem:[#allocation8 + $0x14] ss:$8 sps:$4 sm:$0xff]  }
 0x231   :  { %3792 = vmatprep.subr.bf16.mxu1 %v5769_v13  ;;  %v5836_v13 = vld [vmem:[#allocation8 + $0x10] ss:$8 sps:$4 sm:$0xff]   ;;  %4258 = vmatprep.subr.bf16.mxu0 %v5838_v12  ;;  %v5889_v12 = vld [vmem:[#allocation8 + $0x124] ss:$8 sps:$4 sm:$0xff]  }
 0x233   :  { %4259 = vmatpush1.bf16.msra.mxu0 %v5836_v13  ;;  %v5887_v13 = vld [vmem:[#allocation8 + $0x120] ss:$8 sps:$4 sm:$0xff]  }
 0x234   :  { %3793 = vmatpush1.bf16.msra.mxu1 %v5767_v14  ;;  %v5841_v14 = vld [vmem:[#allocation8 + $0x24] ss:$8 sps:$4 sm:$0xff]  }
 0x235   :  { %3794 = vmatprep.subr.bf16.mxu1 %v5772_v15  ;;  %4260 = vmatprep.subr.bf16.mxu0 %v5841_v14  ;;  %v5842_v15 = vld [vmem:[#allocation8 + $0x30] ss:$8 sps:$4 sm:$0xff]   ;;  %v5895_v14 = vld [vmem:[#allocation8 + $0x144] ss:$8 sps:$4 sm:$0xff]  }
 0x237   :  { %4261 = vmatpush1.bf16.msra.mxu0 %v5839_v55  ;;  %v5893_v55 = vld [vmem:[#allocation8 + $0x140] ss:$8 sps:$4 sm:$0xff]  }
 0x238   :  { %3795 = vmatpush1.bf16.msra.mxu1 %v5770_v17  ;;  %4262 = vmatprep.subr.bf16.mxu0 %v5844_v56  ;;  %v5847_v17 = vld [vmem:[#allocation8 + $0x44] ss:$8 sps:$4 sm:$0xff]   ;;  %v5898_v56 = vld [vmem:[#allocation8 + $0x154] ss:$8 sps:$4 sm:$0xff]  }
 0x239   :  { %3796 = vmatprep.subr.bf16.mxu1 %v5775_v18  ;;  %v5845_v18 = vld [vmem:[#allocation8 + $0x40] ss:$8 sps:$4 sm:$0xff]  }
 0x23b   :  { %4263 = vmatpush1.bf16.msra.mxu0 %v5842_v15  ;;  %v5896_v15 = vld [vmem:[#allocation8 + $0x150] ss:$8 sps:$4 sm:$0xff]  }
 0x23c   :  { %3797 = vmatpush1.bf16.msra.mxu1 %v5773_v19  ;;  %4264 = vmatprep.subr.bf16.mxu0 %v5847_v17  ;;  %v5850_v19 = vld [vmem:[#allocation8 + $0x54] ss:$8 sps:$4 sm:$0xff]   ;;  %v5901_v17 = vld [vmem:[#allocation8 + $0x164] ss:$8 sps:$4 sm:$0xff]  }
 0x23d   :  { %3798 = vmatprep.subr.bf16.mxu1 %v5778_v20  ;;  %v5848_v20 = vld [vmem:[#allocation8 + $0x50] ss:$8 sps:$4 sm:$0xff]  }
 0x23f   :  { %4265 = vmatpush1.bf16.msra.mxu0 %v5845_v18  ;;  %v5899_v18 = vld [vmem:[#allocation8 + $0x160] ss:$8 sps:$4 sm:$0xff]  }
 0x240   :  { %3799 = vmatpush1.bf16.msra.mxu1 %v5776_v21  ;;  %4266 = vmatprep.subr.bf16.mxu0 %v5850_v19  ;;  %v5853_v21 = vld [vmem:[#allocation8 + $0x64] ss:$8 sps:$4 sm:$0xff]   ;;  %v5904_v19 = vld [vmem:[#allocation8 + $0x174] ss:$8 sps:$4 sm:$0xff]  }
 0x241   :  { %3800 = vmatprep.subr.bf16.mxu1 %v5781_v22  ;;  %v5851_v22 = vld [vmem:[#allocation8 + $0x60] ss:$8 sps:$4 sm:$0xff]  }
 0x243   :  { %4267 = vmatpush1.bf16.msra.mxu0 %v5848_v20  ;;  %v5902_v20 = vld [vmem:[#allocation8 + $0x170] ss:$8 sps:$4 sm:$0xff]  }
 0x244   :  { %3801 = vmatpush1.bf16.msra.mxu1 %v5779_v24  ;;  %4268 = vmatprep.subr.bf16.mxu0 %v5853_v21  ;;  %v5856_v24 = vld [vmem:[#allocation8 + $0x74] ss:$8 sps:$4 sm:$0xff]   ;;  %v5907_v21 = vld [vmem:[#allocation8 + $0x184] ss:$8 sps:$4 sm:$0xff]  }
 0x245   :  { %3802 = vmatprep.subr.bf16.mxu1 %v5784_v26  ;;  %v5854_v26 = vld [vmem:[#allocation8 + $0x70] ss:$8 sps:$4 sm:$0xff]  }
 0x247   :  { %4269 = vmatpush1.bf16.msra.mxu0 %v5851_v22  ;;  %v5905_v22 = vld [vmem:[#allocation8 + $0x180] ss:$8 sps:$4 sm:$0xff]  }
 0x248   :  { %3803 = vmatpush1.bf16.msra.mxu1 %v5782_v27  ;;  %4270 = vmatprep.subr.bf16.mxu0 %v5856_v24  ;;  %v5859_v27 = vld [vmem:[#allocation8 + $0x84] ss:$8 sps:$4 sm:$0xff]   ;;  %v5910_v24 = vld [vmem:[#allocation8 + $0x194] ss:$8 sps:$4 sm:$0xff]  }
 0x249   :  { %3813 = vmatprep.subr.bf16.mxu1 %v5787_v28  ;;  %v5857_v28 = vld [vmem:[#allocation8 + $0x80] ss:$8 sps:$4 sm:$0xff]  }
 0x24b   :  { %3805 = vmatmul.mubr.bf16.vlgmr.msra.gmra.mrb[4].mxu1 %v6199_v49  ;;  %v5800_v49 = vld [vmem:[#allocation5 + $0xea8] ss:$16 sps:$4 sm:$0xff]   ;;  %4271 = vmatpush1.bf16.msra.mxu0 %v5854_v26  ;;  %v5908_v26 = vld [vmem:[#allocation8 + $0x190] ss:$8 sps:$4 sm:$0xff]  }
 0x24c   :  { %3814 = vmatpush1.bf16.msra.mxu1 %v5785_v29  ;;  %3845 = vmatprep.mubr.bf16.mxu1 %v6201_v25  ;;  %v5803_v25 = vld [vmem:[#allocation5 + $0xec8] ss:$16 sps:$4 sm:$0xff]  }
 0x24d   :  { %3815 = vmatprep.subr.bf16.mxu1 %v5790_v30  ;;  %4272 = vmatprep.subr.bf16.mxu0 %v5859_v27  ;;  %v5862_v29 = vld [vmem:[#allocation8 + $0x94] ss:$8 sps:$4 sm:$0xff]   ;;  %v5860_v30 = vld [vmem:[#allocation8 + $0x90] ss:$8 sps:$4 sm:$0xff]   ;;  %v5913_v27 = vld [vmem:[#allocation8 + $0x1a4] ss:$8 sps:$4 sm:$0xff]  }
 0x24f   :  { %4273 = vmatpush1.bf16.msra.mxu0 %v5857_v28  ;;  %v5911_v28 = vld [vmem:[#allocation8 + $0x1a0] ss:$8 sps:$4 sm:$0xff]  }
 0x250   :  { %3816 = vmatpush1.bf16.msra.mxu1 %v5788_v31  ;;  %4274 = vmatprep.subr.bf16.mxu0 %v5862_v29  ;;  %v5865_v31 = vld [vmem:[#allocation8 + $0xa4] ss:$8 sps:$4 sm:$0xff]   ;;  %v5916_v29 = vld [vmem:[#allocation8 + $0x1b4] ss:$8 sps:$4 sm:$0xff]  }
 0x251   :  { %3817 = vmatprep.subr.bf16.mxu1 %v5793_v33  ;;  %v5863_v33 = vld [vmem:[#allocation8 + $0xa0] ss:$8 sps:$4 sm:$0xff]  }
 0x253   :  { %4275 = vmatpush1.bf16.msra.mxu0 %v5860_v30  ;;  %v5914_v30 = vld [vmem:[#allocation8 + $0x1b0] ss:$8 sps:$4 sm:$0xff]  }
 0x254   :  { %3818 = vmatpush1.bf16.msra.mxu1 %v5791_v34  ;;  %4276 = vmatprep.subr.bf16.mxu0 %v5865_v31  ;;  %v5868_v34 = vld [vmem:[#allocation8 + $0xb4] ss:$8 sps:$4 sm:$0xff]   ;;  %v5919_v31 = vld [vmem:[#allocation8 + $0x1c4] ss:$8 sps:$4 sm:$0xff]  }
 0x255   :  { %3819 = vmatprep.subr.bf16.mxu1 %v5796_v35  ;;  %v5866_v35 = vld [vmem:[#allocation8 + $0xb0] ss:$8 sps:$4 sm:$0xff]  }
 0x257   :  { %4277 = vmatpush1.bf16.msra.mxu0 %v5863_v33  ;;  %v5917_v33 = vld [vmem:[#allocation8 + $0x1c0] ss:$8 sps:$4 sm:$0xff]  }
 0x258   :  { %3820 = vmatpush1.bf16.msra.mxu1 %v5794_v52  ;;  %4278 = vmatprep.subr.bf16.mxu0 %v5868_v34  ;;  %v5871_v52 = vld [vmem:[#allocation8 + $0xc4] ss:$8 sps:$4 sm:$0xff]   ;;  %v5922_v34 = vld [vmem:[#allocation8 + $0x1d4] ss:$8 sps:$4 sm:$0xff]  }
 0x259   :  { %3821 = vmatprep.subr.bf16.mxu1 %v5799_v37  ;;  %v5869_v37 = vld [vmem:[#allocation8 + $0xc0] ss:$8 sps:$4 sm:$0xff]  }
 0x25b   :  { %4279 = vmatpush1.bf16.msra.mxu0 %v5866_v35  ;;  %v5920_v35 = vld [vmem:[#allocation8 + $0x1d0] ss:$8 sps:$4 sm:$0xff]  }
 0x25c   :  { %3822 = vmatpush1.bf16.msra.mxu1 %v5797_v38  ;;  %4280 = vmatprep.subr.bf16.mxu0 %v5871_v52  ;;  %v628_v38 = vsub.s32 2, %v6216_v63  ;;  %v5925_v52 = vld [vmem:[#allocation8 + $0x1e4] ss:$8 sps:$4 sm:$0xff]  }
 0x25d   :  { %3823 = vmatprep.subr.bf16.mxu1 %v5802_v39  ;;  %v632_v39 = vsub.s32 3, %v6216_v63  ;;  %v5883_v63 = vld [vmem:[#allocation8 + $0x104] ss:$8 sps:$4 sm:$0xff]  }
 0x25f   :  { %4281 = vmatpush1.bf16.msra.mxu0 %v5869_v37  ;;  %v5923_v37 = vld [vmem:[#allocation8 + $0x1e0] ss:$8 sps:$4 sm:$0xff]  }
 0x260   :  { %3824 = vmatpush1.bf16.msra.mxu1 %v5800_v49  ;;  %v629_v49 = vrot.slane %v6219_v0, %v628_v38  ;;  %v5928_v38 = vld [vmem:[#allocation8 + $0x1f4] ss:$8 sps:$4 sm:$0xff]  }
 0x261   :  { %3825 = vmatprep.subr.bf16.mxu1 %v5805_v40  ;;  %v633_v40 = vrot.slane %v6219_v0, %v632_v39  ;;  %v6067_v0 = vmov 0   ;;  %v5926_v39 = vld [vmem:[#allocation8 + $0x1f0] ss:$8 sps:$4 sm:$0xff]  }
 0x262   :  { %5064 = vset.pattern.permute.xlu0 %v6067_v0 }
 0x264   :  { %3826 = vmatpush1.bf16.msra.mxu1 %v5803_v25 }
 0x265   :  { %3827 = vmatprep.subr.bf16.mxu1 %v5808_v41 }
 0x268   :  { %3828 = vmatpush1.bf16.msra.mxu1 %v5806_v36 }
 0x269   :  { %3829 = vmatprep.subr.bf16.mxu1 %v5811_v42 }
 0x26c   :  { %3830 = vmatpush1.bf16.msra.mxu1 %v5809_v43 }
 0x26d   :  { %3831 = vmatprep.subr.bf16.mxu1 %v5814_v44 }
 0x270   :  { %3832 = vmatpush1.bf16.msra.mxu1 %v5812_v45 }
 0x271   :  { %3833 = vmatprep.subr.bf16.mxu1 %v5817_v46 }
 0x274   :  { %3834 = vmatpush1.bf16.msra.mxu1 %v5815_v47 }
 0x275   :  { %3835 = vmatprep.subr.bf16.mxu1 %v5820_v48 }
 0x278   :  { %3836 = vmatpush1.bf16.msra.mxu1 %v5818_v50 }
 0x279   :  { %3837 = vmatprep.subr.bf16.mxu1 %v5823_v51 }
 0x27c   :  { %3838 = vmatpush1.bf16.msra.mxu1 %v5821_v53 }
 0x27d   :  { %3839 = vmatprep.subr.bf16.mxu1 %v5826_v54  ;;  %v5872_v54 = vld [vmem:[#allocation8 + $0xd0] ss:$8 sps:$4 sm:$0xff]  }
 0x280   :  { %3840 = vmatpush1.bf16.msra.mxu1 %v5824_v57  ;;  %v5874_v57 = vld [vmem:[#allocation8 + $0xd4] ss:$8 sps:$4 sm:$0xff]  }
 0x281   :  { %3841 = vmatprep.subr.bf16.mxu1 %v5829_v58  ;;  %v5877_v58 = vld [vmem:[#allocation8 + $0xe4] ss:$8 sps:$4 sm:$0xff]   ;;  %4282 = vmatprep.subr.bf16.mxu0 %v5874_v57 }
 0x282   :  { %4283 = vmatpush1.bf16.msra.mxu0 %v5872_v54 }
 0x283   :  { %4284 = vmatprep.subr.bf16.mxu0 %v5877_v58 }
 0x284   :  { %3842 = vmatpush1.bf16.msra.mxu1 %v5827_v59  ;;  %v5875_v59 = vld [vmem:[#allocation8 + $0xe0] ss:$8 sps:$4 sm:$0xff]  }
 0x285   :  { %3843 = vmatprep.subr.bf16.mxu1 %v5832_v61  ;;  %v5880_v61 = vld [vmem:[#allocation8 + $0xf4] ss:$8 sps:$4 sm:$0xff]  }
 0x286   :  { %4285 = vmatpush1.bf16.msra.mxu0 %v5875_v59 }
 0x287   :  { %4286 = vmatprep.subr.bf16.mxu0 %v5880_v61 }
 0x288   :  { %3844 = vmatpush1.bf16.msra.mxu1 %v5830_v62  ;;  %v5878_v62 = vld [vmem:[#allocation8 + $0xf0] ss:$8 sps:$4 sm:$0xff]  }
 0x28a   :  { %4287 = vmatpush1.bf16.msra.mxu0 %v5878_v62 }
 0x28b   :  { %3846 = vmatmul.mubr.bf16.vlgmr.msra.gmra.mrb[4].mxu1 %v6207_v60  ;;  %4297 = vmatprep.subr.bf16.mxu0 %v5883_v63 }
 0x2df   :  { %v3519_v11 = vpop.f32.mrb[0].mxu0 }
 0x2e0   :  { %v6226_v60 = vadd.f32 %v3519_v11, %v3233_v4  ;;  %v3521_v23 = vpop.f32.mrb[1].mxu0 }
 0x2e1   :  { %v6228_v5 = vadd.f32 %v3521_v23, %v3235_v16  ;;  %v3523_v6 = vpop.f32.mrb[2].mxu0  ;;  %v5881_v23 = vld [vmem:[#allocation8 + $0x100] ss:$8 sps:$4 sm:$0xff]  }
 0x2e2   :  { %v3524_v7 = vpop.f32.mrb[3].mxu0  ;;  %v3854_v25 = vmul.f32 %v6226_v60, %v6226_v60 }
 0x2e3   :  { %v3855_v41 = vmul.f32 %v6228_v5, %v6228_v5  ;;  %v5886_v7 = vld [vmem:[#allocation8 + $0x114] ss:$8 sps:$4 sm:$0xff]  }
 0x2e5   :  { %v3858_v48 = vadd.f32 %v3855_v41, %v3854_v25 }
 0x35e   :  { %v3847_v36 = vpop.f32.mrb[4].mxu1 }
 0x35f   :  { %v6238_v42 = vadd.f32 %v3847_v36, %v629_v49  ;;  %v3849_v43 = vpop.f32.mrb[5].mxu1 }
 0x360   :  { %v4997_v44 = vadd.f32 %v3849_v43, %v633_v40  ;;  %v3851_v45 = vpop.f32.mrb[6].mxu1 }
 0x361   :  { %v3856_v46 = vmul.f32 %v6238_v42, %v6238_v42  ;;  %v3852_v47 = vpop.f32.mrb[7].mxu1 }
 0x362   :  { %v3857_v50 = vmul.f32 %v4997_v44, %v4997_v44 }
 0x363   :  { %v3859_v51 = vadd.f32 %v3858_v48, %v3856_v46 }
 0x365   :  { %v3860_v53 = vadd.f32 %v3859_v51, %v3857_v50 }
 0x367   :  { %3861 = vadd.xlane.f32.xlu0 %v3860_v53  ;;  %v4339_v53 = vand.u32 127, %v618_v8 }
 0x369   :  { %v4340_v62 = vadd.s32 128, %v4339_v53 }
 0x37d   :  { %4343 = vperm.xlu0 %5064, %v4341_v32  }
 0x3f4   :  { %v3862_v1 = vpop.xlane.xlu0 %3861 }
 0x3f5   :  { %5929 = vrsqrt.f32 %v3862_v1 }
 0x3fc   :  { %v4344_v63 = vpop.permute.xlu0 %4343 }
 0x3fd   :  { %vm4345_vm4 = vcmp.eq.s32.totalorder %v4339_v53, %v4344_v63  ;;  %vm4346_vm5 = vcmp.eq.s32.totalorder %v4340_v62, %v4344_v63 }
 0x3ff   :  { %v6245_v2 = vpop.eup %5929 }
 0x400   :  { %v3865_v3 = vmul.f32 %v6245_v2, %v6228_v5  ;;  %v3864_v4 = vmul.f32 %v6245_v2, %v6226_v60  ;;  %v3867_v16 = vmul.f32 %v6245_v2, %v4997_v44  ;;  %v5892_v5 = vld [vmem:[#allocation8 + $0x134] ss:$8 sps:$4 sm:$0xff]   ;;  %v5890_v60 = vld [vmem:[#allocation8 + $0x130] ss:$8 sps:$4 sm:$0xff]   ;;  %v3866_v49 = vmul.f32 %v6245_v2, %v6238_v42 }
 0x402   :  { %v3869_v11 = vpack.c.bf16 %v3865_v3, %v3865_v3  ;;  %v3868_v6 = vpack.c.bf16 %v3864_v4, %v3864_v4  ;;  %v3871_v9 = vpack.c.bf16 %v3867_v16, %v3867_v16  ;;  %v3870_v40 = vpack.c.bf16 %v3866_v49, %v3866_v49 }
 0x404   :  { %4288 = vmatprep.mubr.bf16.mxu0 %v3869_v11 }
 0x405   :  { %4289 = vmatmul.mubr.bf16.vlgmr.msra.gmra.mrb[4].mxu0 %v3868_v6 }
 0x406   :  { %4298 = vmatpush1.bf16.msra.mxu0 %v5881_v23  ;;  %4329 = vmatprep.mubr.bf16.mxu0 %v3871_v9 }
 0x407   :  { %4299 = vmatprep.subr.bf16.mxu0 %v5886_v7 }
 0x40a   :  { %4300 = vmatpush1.bf16.msra.mxu0 %v5884_v10 }
 0x40b   :  { %4301 = vmatprep.subr.bf16.mxu0 %v5889_v12 }
 0x40e   :  { %4302 = vmatpush1.bf16.msra.mxu0 %v5887_v13 }
 0x40f   :  { %4303 = vmatprep.subr.bf16.mxu0 %v5892_v5 }
 0x412   :  { %4304 = vmatpush1.bf16.msra.mxu0 %v5890_v60 }
 0x413   :  { %4305 = vmatprep.subr.bf16.mxu0 %v5895_v14 }
 0x416   :  { %4306 = vmatpush1.bf16.msra.mxu0 %v5893_v55 }
 0x417   :  { %4307 = vmatprep.subr.bf16.mxu0 %v5898_v56 }
 0x41a   :  { %4308 = vmatpush1.bf16.msra.mxu0 %v5896_v15 }
 0x41b   :  { %4309 = vmatprep.subr.bf16.mxu0 %v5901_v17 }
 0x41e   :  { %4310 = vmatpush1.bf16.msra.mxu0 %v5899_v18 }
 0x41f   :  { %4311 = vmatprep.subr.bf16.mxu0 %v5904_v19 }
 0x422   :  { %4312 = vmatpush1.bf16.msra.mxu0 %v5902_v20 }
 0x423   :  { %4313 = vmatprep.subr.bf16.mxu0 %v5907_v21 }
 0x426   :  { %4314 = vmatpush1.bf16.msra.mxu0 %v5905_v22 }
 0x427   :  { %4315 = vmatprep.subr.bf16.mxu0 %v5910_v24 }
 0x42a   :  { %4316 = vmatpush1.bf16.msra.mxu0 %v5908_v26 }
 0x42b   :  { %4317 = vmatprep.subr.bf16.mxu0 %v5913_v27 }
 0x42e   :  { %4318 = vmatpush1.bf16.msra.mxu0 %v5911_v28 }
 0x42f   :  { %4319 = vmatprep.subr.bf16.mxu0 %v5916_v29 }
 0x432   :  { %4320 = vmatpush1.bf16.msra.mxu0 %v5914_v30 }
 0x433   :  { %4321 = vmatprep.subr.bf16.mxu0 %v5919_v31 }
 0x436   :  { %4322 = vmatpush1.bf16.msra.mxu0 %v5917_v33 }
 0x437   :  { %4323 = vmatprep.subr.bf16.mxu0 %v5922_v34 }
 0x43a   :  { %4324 = vmatpush1.bf16.msra.mxu0 %v5920_v35 }
 0x43b   :  { %4325 = vmatprep.subr.bf16.mxu0 %v5925_v52 }
 0x43e   :  { %4326 = vmatpush1.bf16.msra.mxu0 %v5923_v37 }
 0x43f   :  { %4327 = vmatprep.subr.bf16.mxu0 %v5928_v38 }
 0x442   :  { %4328 = vmatpush1.bf16.msra.mxu0 %v5926_v39 }
 0x445   :  { %4330 = vmatmul.mubr.bf16.vlgmr.msra.gmra.mrb[4].mxu0 %v3870_v40 }
 0x518   :  { %v4331_v25 = vpop.f32.mrb[4].mxu0 }
 0x519   :  { %v4347_v41 = vmul.f32 %v4331_v25, %v4331_v25  ;;  %v4333_v36 = vpop.f32.mrb[5].mxu0  ;;  %v4367_v1 = vmul.f32 0.9800666, %v4331_v25  ;;  %vm4373_vm6 = vcmp.lt.f32.partialorder %v4331_v25, -0.9800666 }
 0x51a   :  { %v4348_v43 = vmul.f32 %v4333_v36, %v4333_v36  ;;  %v4335_v44 = vpop.f32.mrb[6].mxu0  ;;  %v4368_v4 = vmul.f32 0.9800666, %v4333_v36  ;;  %vm4374_vm7 = vcmp.lt.f32.partialorder %v4333_v36, -0.9800666 }
 0x51b   :  { %v4349_v45 = vsub.f32 1.0, %v4347_v41  ;;  %v4336_v46 = vpop.f32.mrb[7].mxu0 }
 0x51c   :  { %v4350_v47 = vsub.f32 1.0, %v4348_v43 }
 0x51d   :  { %v4351_v48 = vmax.f32 %v4349_v45, 0.0 }
 0x51e   :  { %v4352_v50 = vmax.f32 %v4350_v47, 0.0 }
 0x51f   :  { %5931 = vrsqrt.f32 %v4351_v48  ;;  %vm4355_vm0 = vcmp.eq.f32.partialorder %v4351_v48, inf  ;;  %v4358_v57 = vand.u32 2147483648, %v4351_v48  ;;  %vm4357_vm1 = vcmp.eq.f32.partialorder %v4351_v48, 0.0 }
 0x520   :  { %5933 = vrsqrt.f32 %v4352_v50  ;;  %vm4362_vm2 = vcmp.eq.f32.partialorder %v4352_v50, inf  ;;  %v4365_v61 = vand.u32 2147483648, %v4352_v50  ;;  %vm4364_vm3 = vcmp.eq.f32.partialorder %v4352_v50, 0.0 }
 0x529   :  { %v5932_v51 = vpop.eup %5931 }
 0x52a   :  { %v5934_v54 = vpop.eup %5933  ;;  %v4354_v42 = vmul.f32 %v5932_v51, %v4351_v48 }
 0x52b   :  { %v4361_v58 = vmul.f32 %v5934_v54, %v4352_v50 }
 0x52c   :  { %v4356_v59 = vsel %vm4355_vm0, %v4351_v48, %v4354_v42 }
 0x52d   :  { %v4359_v32 = vsel %vm4357_vm1, %v4358_v57, %v4356_v59  ;;  %v4363_v0 = vsel %vm4362_vm2, %v4352_v50, %v4361_v58 }
 0x52e   :  { %v4366_v2 = vsel %vm4364_vm3, %v4365_v61, %v4363_v0  ;;  %v4369_v3 = vmul.f32 0.19866933, %v4359_v32 }
 0x52f   :  { %v4370_v16 = vmul.f32 0.19866933, %v4366_v2 }
 0x530   :  { %v4371_v8 = vsub.f32 %v4367_v1, %v4369_v3 }
 0x531   :  { %v4372_v11 = vsub.f32 %v4368_v4, %v4370_v16 }
 0x532   :  { %v4375_v23 = vsel %vm4373_vm6, -1.0, %v4371_v8 }
 0x533   :  { %v4376_v6 = vsel %vm4374_vm7, -1.0, %v4372_v11  ;;  %v4377_v7 = vsel %vm4345_vm4, %v4375_v23, %v4331_v25 }
 0x534   :  { %v4378_v9 = vsel %vm4346_vm5, %v4376_v6, %v4333_v36  ;;  %v4379_v10 = vmul.f32 64.0, %v4377_v7 }
 0x535   :  { %v4380_v12 = vmul.f32 64.0, %v4378_v9 }
 0x537   :  { %v4381_v13 = vmax.f32 %v4379_v10, %v4380_v12 }
 0x539   :  { %4382 = vmax.xlane.f32.xlu1 %v4381_v13 }
 0x5c6   :  { %v4383_v5 = vpop.xlane.xlu1 %4382 }
 0x5c7   :  { %v4384_v60 = vsub.f32 %v4379_v10, %v4383_v5  ;;  %v4385_v14 = vsub.f32 %v4380_v12, %v4383_v5 }
 0x5c9   :  { %v4386_v55 = vmul.f32 1.442695, %v4384_v60  ;;  %v4388_v56 = vmul.f32 1.442695, %v4385_v14 }
 0x5cb   :  { %5935 = vpow2.f32 %v4386_v55 }
 0x5cc   :  { %5937 = vpow2.f32 %v4388_v56 }
 0x5d5   :  { %v5936_v15 = vpop.eup %5935 }
 0x5d6   :  { %v5938_v17 = vpop.eup %5937 }
 0x5d7   :  { %v4390_v18 = vadd.f32 %v5938_v17, %v5936_v15 }
 0x5d9   :  { %4391 = vadd.xlane.f32.xlu1 %v4390_v18 }
 0x666   :  { %v4392_v19 = vpop.xlane.xlu1 %4391 }
 0x667   :  { %5939 = vlog2.f32 %v4392_v19 }
 0x671   :  { %v5940_v20 = vpop.eup %5939 }
 0x672   :  { %v4394_v21 = vmul.f32 0.6931472, %v5940_v20 }
 0x674   :  { %v4395_v22 = vsub.f32 %v4384_v60, %v4394_v21  ;;  %v4396_v24 = vsub.f32 %v4385_v14, %v4394_v21 }
 0x676   :  { %4397 = vst [vmem:[#allocation10] sm:$0xff] %v4395_v22  ;;  %4398 = vst [vmem:[#allocation10 + $0x8] sm:$0xff] %v4396_v24 }
 0x677   :  { %6040 = shalt.err (!%p6037_p8)
}
 0x678   :  { %s6041_s21 = scalar_lea.hbm %s6272_s5, 256 }
 0x679   :  { %p6042_p9 = scmp.ne.s32.totalorder %s6272_s5, %s6041_s21  ;;  %p6045_p10 = scmp.lt.u32.totalorder %s6041_s21, %s6272_s5 }
 0x67b   :  { %p6047_p11 = pnand %p6045_p10, %p6042_p9 }
 0x67d   :  { %6050 = shalt.err (!%p6047_p11)
}
 0x67e   :  { %4408 = dma.vmem_to_hbm [thread:$0]  %s4406_s2, 256, %s6272_s5, [#allocation4]  }
 0x67f   :  { %6057 = dma.done.wait [#allocation4], 256  }
 0x680   :  { %6058 = vsyncadd [#allocation4], 4294967040 }
 0x681   :  { %4412 = vsyncpa [#allocation3], 1 }
 0x682   :  { %4413 = vsyncpa [#allocation6], 1 }
 0x683   :  { %4414 = vsyncpa [#allocation9], 1 }
 0x684   :  { %4415 = vsyncpa [#allocation4], 1 }

</bundles_post_ra>
